<compile_context>
chip_gen: v7x
topology: tpu7x:2x2x1
jax: 0.10.0
libtpu: 0.0.40
codegen_flags: <defaults>
</compile_context>

<pallas_src>
import jax
import jax.numpy as jnp
from jax import lax
from jax.experimental import pallas as pl
from jax.experimental.pallas import tpu as pltpu


_SUB_ROWS = 128  # rows per inner sub-slab (keeps h1/h2 at (128, 256) f32 per step)


def critic_kernel(x_ref, w1_ref, b1_ref, w2_ref, b2_ref, w3_ref, b3_ref, out_ref):
    """Fused 3-layer MLP over one batch tile; all operands VMEM-resident."""
    n_sub = x_ref.shape[0] // _SUB_ROWS

    # Small operands: load once per tile (hoisted out of the unrolled loop).
    b1 = b1_ref[...]          # (1, H1)
    b2 = b2_ref[...]          # (1, H2)
    w3 = w3_ref[...]          # (1, H2)
    b3 = b3_ref[...]          # (1, 1)

    def body(s, carry):
        row = pl.multiple_of(s * _SUB_ROWS, _SUB_ROWS)
        x = x_ref[pl.ds(row, _SUB_ROWS), :]

        # Layer 1: MXU matmul, f32 accumulation, ReLU on VPU.
        h1 = jnp.dot(x, w1_ref[...], preferred_element_type=jnp.float32) + b1
        h1 = jnp.maximum(h1, 0.0)

        # Layer 2: MXU matmul (bf16 operands if enabled), f32 accumulation, ReLU.
        h2 = jnp.dot(h1.astype(w2_ref.dtype), w2_ref[...],
                     preferred_element_type=jnp.float32) + b2
        h2 = jnp.maximum(h2, 0.0)

        # Layer 3 (256 -> 1): VPU multiply + lane reduction instead of an MXU pass
        # that would spend a full push on a single output column.
        v = jnp.sum(h2 * w3, axis=-1).reshape(1, _SUB_ROWS) + b3

        # Lane-dense store: batch lives on the lane axis of the (1, batch_tile) block.
        out_ref[:, pl.ds(row, _SUB_ROWS)] = v
        return carry

    lax.fori_loop(0, n_sub, body, 0, unroll=True)


def critic_forward(state, params, *, batch_tile=256, use_bf16=False):
    """state: (B, input_dims) float32 -> (B, 1) float32."""
    w1, b1, w2, b2, w3, b3 = params
    B, D = state.shape
    H1 = w1.shape[1]
    H2 = w2.shape[1]
    assert batch_tile % _SUB_ROWS == 0, "batch_tile must be a multiple of 128"

    # Pad the batch to a multiple of the tile (handles ragged batches).
    B_pad = ((B + batch_tile - 1) // batch_tile) * batch_tile
    if B_pad != B:
        state = jnp.pad(state, ((0, B_pad - B), (0, 0)))

    # W3 as a (1, H2) row for the VPU reduction; b3 as (1, 1).
    w3_row = w3.reshape(1, H2)
    b3_mat = b3.reshape(1, 1)

    if use_bf16:  # MXU is bf16-native; keep f32 accumulation + f32 biases/last layer.
        state = state.astype(jnp.bfloat16)
        w1 = w1.astype(jnp.bfloat16)
        w2 = w2.astype(jnp.bfloat16)

    grid = (B_pad // batch_tile,)

    flops = 2 * B_pad * (D * H1 + H1 * H2 + H2)
    bytes_accessed = 4 * (B_pad * D + D * H1 + H1 + H1 * H2 + H2 + H2 + 1 + B_pad)

    out = pl.pallas_call(
        critic_kernel,
        out_shape=jax.ShapeDtypeStruct((1, B_pad), jnp.float32),
        grid=grid,
        in_specs=[
            pl.BlockSpec((batch_tile, D), lambda i: (i, 0)),   # state tile
            pl.BlockSpec((D, H1), lambda i: (0, 0)),           # W1 (VMEM-resident)
            pl.BlockSpec((1, H1), lambda i: (0, 0)),           # b1
            pl.BlockSpec((H1, H2), lambda i: (0, 0)),          # W2
            pl.BlockSpec((1, H2), lambda i: (0, 0)),           # b2
            pl.BlockSpec((1, H2), lambda i: (0, 0)),           # W3 row
            pl.BlockSpec((1, 1), lambda i: (0, 0)),            # b3
        ],
        # Lane-dense output block: batch on the lane axis -> unmasked stores.
        out_specs=pl.BlockSpec((1, batch_tile), lambda i: (0, i)),
        compiler_params=pltpu.CompilerParams(
            dimension_semantics=("parallel",),
        ),
        cost_estimate=pl.CostEstimate(
            flops=flops, transcendentals=0, bytes_accessed=bytes_accessed),
    )(state, w1, b1, w2, b2, w3_row, b3_mat)

    return out.reshape(B_pad, 1)[:B]


def init_params(key, input_dims, fc1_dims=256, fc2_dims=256):
    # weights_init_normal analogue: N(0, 0.1) weights, zero biases.
    # TODO(synk): Adam optimizer / checkpoint save-load are host-side training
    # utilities with no kernel equivalent; only the forward pass is implemented.
    k1, k2, k3 = jax.random.split(key, 3)
    w1 = 0.1 * jax.random.normal(k1, (input_dims, fc1_dims), jnp.float32)
    b1 = jnp.zeros((1, fc1_dims), jnp.float32)
    w2 = 0.1 * jax.random.normal(k2, (fc1_dims, fc2_dims), jnp.float32)
    b2 = jnp.zeros((1, fc2_dims), jnp.float32)
    w3 = 0.1 * jax.random.normal(k3, (fc2_dims, 1), jnp.float32)
    b3 = jnp.zeros((1, 1), jnp.float32)
    return (w1, b1, w2, b2, w3, b3)


def critic_ref(state, params):
    w1, b1, w2, b2, w3, b3 = params
    h1 = jnp.maximum(state @ w1 + b1, 0.0)
    h2 = jnp.maximum(h1 @ w2 + b2, 0.0)
    return h2 @ w3 + b3


if __name__ == "__main__":
    key = jax.random.PRNGKey(0)
    k_param, k_state = jax.random.split(key)

    batch = 8          # ragged vs. the 256-row tile -> exercises the padding path
    input_dims = 32
    params = init_params(k_param, input_dims)
    state = jax.random.normal(k_state, (batch, input_dims), jnp.float32)

    ref = critic_ref(state, params)

    # f32 path (tight tolerance).
    out = jax.block_until_ready(critic_forward(state, params))
    assert out.shape == (batch, 1), out.shape
    assert jnp.allclose(out, ref, atol=1e-4, rtol=1e-4), "f32 mismatch vs JAX reference"

    # bf16-matmul path (f32 accumulation; loose tolerance).
    out_bf16 = jax.block_until_ready(critic_forward(state, params, use_bf16=True))
    assert out_bf16.shape == (batch, 1), out_bf16.shape
    assert jnp.allclose(out_bf16, ref, atol=1e-1, rtol=1e-1), "bf16 mismatch vs JAX reference"

    print("KERNEL_OK")
</pallas_src>

<mosaic_0001>
module attributes {stable_mosaic.version = 11 : i64} {
  func.func @critic_kernel(%arg0: i32, %arg1: memref<256x32xf32, #tpu.memory_space<vmem>>, %arg2: memref<32x256xf32, #tpu.memory_space<vmem>>, %arg3: memref<1x256xf32, #tpu.memory_space<vmem>>, %arg4: memref<256x256xf32, #tpu.memory_space<vmem>>, %arg5: memref<1x256xf32, #tpu.memory_space<vmem>>, %arg6: memref<1x256xf32, #tpu.memory_space<vmem>>, %arg7: memref<1x1xf32, #tpu.memory_space<vmem>>, %arg8: memref<1x256xf32, #tpu.memory_space<vmem>>) attributes {dimension_semantics = [#tpu.dimension_semantics<parallel>], iteration_bounds = array<i64: 1>, scalar_prefetch = 0 : i64, scratch_operands = 0 : i64, tpu.core_type = #tpu.core_type<tc>, window_params = [{transform_indices = @transform_0, window_bounds = array<i64: 256, 32>}, {pipeline_mode = #tpu.pipeline_mode<synchronous>, transform_indices = @transform_1, window_bounds = array<i64: 32, 256>}, {pipeline_mode = #tpu.pipeline_mode<synchronous>, transform_indices = @transform_2, window_bounds = array<i64: 1, 256>}, {pipeline_mode = #tpu.pipeline_mode<synchronous>, transform_indices = @transform_3, window_bounds = array<i64: 256, 256>}, {pipeline_mode = #tpu.pipeline_mode<synchronous>, transform_indices = @transform_4, window_bounds = array<i64: 1, 256>}, {pipeline_mode = #tpu.pipeline_mode<synchronous>, transform_indices = @transform_5, window_bounds = array<i64: 1, 256>}, {pipeline_mode = #tpu.pipeline_mode<synchronous>, transform_indices = @transform_6, window_bounds = array<i64: 1, 1>}, {transform_indices = @transform_7, window_bounds = array<i64: 1, 256>}]} {
    %c0 = arith.constant 0 : index
    %c0_0 = arith.constant 0 : index
    %0 = vector.load %arg3[%c0, %c0_0] : memref<1x256xf32, #tpu.memory_space<vmem>>, vector<1x256xf32>
    %c0_1 = arith.constant 0 : index
    %c0_2 = arith.constant 0 : index
    %1 = vector.load %arg5[%c0_1, %c0_2] : memref<1x256xf32, #tpu.memory_space<vmem>>, vector<1x256xf32>
    %c0_3 = arith.constant 0 : index
    %c0_4 = arith.constant 0 : index
    %2 = vector.load %arg6[%c0_3, %c0_4] : memref<1x256xf32, #tpu.memory_space<vmem>>, vector<1x256xf32>
    %c0_5 = arith.constant 0 : index
    %c0_6 = arith.constant 0 : index
    %3 = vector.load %arg7[%c0_5, %c0_6] : memref<1x1xf32, #tpu.memory_space<vmem>>, vector<1x1xf32>
    %c0_i32 = arith.constant 0 : i32
    %c128_i32 = arith.constant 128 : i32
    %4 = arith.muli %c0_i32, %c128_i32 : i32
    %5 = tpu.assume_multiple %4, 128 : i32
    %6 = arith.index_cast %5 : i32 to index
    %c0_7 = arith.constant 0 : index
    %7 = vector.load %arg1[%6, %c0_7] : memref<256x32xf32, #tpu.memory_space<vmem>>, vector<128x32xf32>
    %c0_8 = arith.constant 0 : index
    %c0_9 = arith.constant 0 : index
    %8 = vector.load %arg2[%c0_8, %c0_9] : memref<32x256xf32, #tpu.memory_space<vmem>>, vector<32x256xf32>
    %cst = arith.constant dense<0.000000e+00> : vector<128x256xf32>
    %9 = tpu.matmul %7, %8, %cst {dimension_numbers = #tpu.dot_dimension_numbers<[1], [0], [0], [1], [0, 0, 1, 1], [], []>} : vector<128x32xf32>, vector<32x256xf32>, vector<128x256xf32> -> vector<128x256xf32>
    %10 = vector.broadcast %0 : vector<1x256xf32> to vector<128x256xf32>
    %11 = arith.addf %9, %10 : vector<128x256xf32>
    %cst_10 = arith.constant 0.000000e+00 : f32
    %12 = vector.broadcast %cst_10 : f32 to vector<128x256xf32>
    %13 = arith.maximumf %11, %12 : vector<128x256xf32>
    %c0_11 = arith.constant 0 : index
    %c0_12 = arith.constant 0 : index
    %14 = vector.load %arg4[%c0_11, %c0_12] : memref<256x256xf32, #tpu.memory_space<vmem>>, vector<256x256xf32>
    %cst_13 = arith.constant dense<0.000000e+00> : vector<128x256xf32>
    %15 = tpu.matmul %13, %14, %cst_13 {dimension_numbers = #tpu.dot_dimension_numbers<[1], [0], [0], [1], [0, 0, 1, 1], [], []>} : vector<128x256xf32>, vector<256x256xf32>, vector<128x256xf32> -> vector<128x256xf32>
    %16 = vector.broadcast %1 : vector<1x256xf32> to vector<128x256xf32>
    %17 = arith.addf %15, %16 : vector<128x256xf32>
    %cst_14 = arith.constant 0.000000e+00 : f32
    %18 = vector.broadcast %cst_14 : f32 to vector<128x256xf32>
    %19 = arith.maximumf %17, %18 : vector<128x256xf32>
    %20 = vector.broadcast %2 : vector<1x256xf32> to vector<128x256xf32>
    %21 = arith.mulf %19, %20 : vector<128x256xf32>
    %cst_15 = arith.constant dense<0.000000e+00> : vector<128xf32>
    %22 = vector.multi_reduction <add>, %21, %cst_15 [1] : vector<128x256xf32> to vector<128xf32>
    %23 = vector.shape_cast %22 : vector<128xf32> to vector<1x128xf32>
    %24 = vector.broadcast %3 : vector<1x1xf32> to vector<1x128xf32>
    %25 = arith.addf %23, %24 : vector<1x128xf32>
    %c0_16 = arith.constant 0 : index
    %26 = arith.index_cast %5 : i32 to index
    %27 = vector.load %arg8[%c0_16, %26] : memref<1x256xf32, #tpu.memory_space<vmem>>, vector<1x128xf32>
    tpu.vector_store %arg8[%c0_16, %26], %25 {strides = array<i32>} : memref<1x256xf32, #tpu.memory_space<vmem>>, vector<1x128xf32>,
    %c1_i32 = arith.constant 1 : i32
    %c128_i32_17 = arith.constant 128 : i32
    %28 = arith.muli %c1_i32, %c128_i32_17 : i32
    %29 = tpu.assume_multiple %28, 128 : i32
    %30 = arith.index_cast %29 : i32 to index
    %c0_18 = arith.constant 0 : index
    %31 = vector.load %arg1[%30, %c0_18] : memref<256x32xf32, #tpu.memory_space<vmem>>, vector<128x32xf32>
    %c0_19 = arith.constant 0 : index
    %c0_20 = arith.constant 0 : index
    %32 = vector.load %arg2[%c0_19, %c0_20] : memref<32x256xf32, #tpu.memory_space<vmem>>, vector<32x256xf32>
    %cst_21 = arith.constant dense<0.000000e+00> : vector<128x256xf32>
    %33 = tpu.matmul %31, %32, %cst_21 {dimension_numbers = #tpu.dot_dimension_numbers<[1], [0], [0], [1], [0, 0, 1, 1], [], []>} : vector<128x32xf32>, vector<32x256xf32>, vector<128x256xf32> -> vector<128x256xf32>
    %34 = vector.broadcast %0 : vector<1x256xf32> to vector<128x256xf32>
    %35 = arith.addf %33, %34 : vector<128x256xf32>
    %cst_22 = arith.constant 0.000000e+00 : f32
    %36 = vector.broadcast %cst_22 : f32 to vector<128x256xf32>
    %37 = arith.maximumf %35, %36 : vector<128x256xf32>
    %c0_23 = arith.constant 0 : index
    %c0_24 = arith.constant 0 : index
    %38 = vector.load %arg4[%c0_23, %c0_24] : memref<256x256xf32, #tpu.memory_space<vmem>>, vector<256x256xf32>
    %cst_25 = arith.constant dense<0.000000e+00> : vector<128x256xf32>
    %39 = tpu.matmul %37, %38, %cst_25 {dimension_numbers = #tpu.dot_dimension_numbers<[1], [0], [0], [1], [0, 0, 1, 1], [], []>} : vector<128x256xf32>, vector<256x256xf32>, vector<128x256xf32> -> vector<128x256xf32>
    %40 = vector.broadcast %1 : vector<1x256xf32> to vector<128x256xf32>
    %41 = arith.addf %39, %40 : vector<128x256xf32>
    %cst_26 = arith.constant 0.000000e+00 : f32
    %42 = vector.broadcast %cst_26 : f32 to vector<128x256xf32>
    %43 = arith.maximumf %41, %42 : vector<128x256xf32>
    %44 = vector.broadcast %2 : vector<1x256xf32> to vector<128x256xf32>
    %45 = arith.mulf %43, %44 : vector<128x256xf32>
    %cst_27 = arith.constant dense<0.000000e+00> : vector<128xf32>
    %46 = vector.multi_reduction <add>, %45, %cst_27 [1] : vector<128x256xf32> to vector<128xf32>
    %47 = vector.shape_cast %46 : vector<128xf32> to vector<1x128xf32>
    %48 = vector.broadcast %3 : vector<1x1xf32> to vector<1x128xf32>
    %49 = arith.addf %47, %48 : vector<1x128xf32>
    %c0_28 = arith.constant 0 : index
    %50 = arith.index_cast %29 : i32 to index
    %51 = vector.load %arg8[%c0_28, %50] : memref<1x256xf32, #tpu.memory_space<vmem>>, vector<1x128xf32>
    tpu.vector_store %arg8[%c0_28, %50], %49 {strides = array<i32>} : memref<1x256xf32, #tpu.memory_space<vmem>>, vector<1x128xf32>,
    %c2_i32 = arith.constant 2 : i32
    return
  }
  func.func @transform_0(%arg0: i32) -> (i32, i32) {
    %c0_i32 = arith.constant 0 : i32
    %c0_i32_0 = arith.constant 0 : i32
    return %arg0, %c0_i32 : i32, i32
  }
  func.func @transform_1(%arg0: i32) -> (i32, i32) {
    %c0_i32 = arith.constant 0 : i32
    %c0_i32_0 = arith.constant 0 : i32
    %c0_i32_1 = arith.constant 0 : i32
    return %c0_i32, %c0_i32_0 : i32, i32
  }
  func.func @transform_2(%arg0: i32) -> (i32, i32) {
    %c0_i32 = arith.constant 0 : i32
    %c0_i32_0 = arith.constant 0 : i32
    %c0_i32_1 = arith.constant 0 : i32
    return %c0_i32, %c0_i32_0 : i32, i32
  }
  func.func @transform_3(%arg0: i32) -> (i32, i32) {
    %c0_i32 = arith.constant 0 : i32
    %c0_i32_0 = arith.constant 0 : i32
    %c0_i32_1 = arith.constant 0 : i32
    return %c0_i32, %c0_i32_0 : i32, i32
  }
  func.func @transform_4(%arg0: i32) -> (i32, i32) {
    %c0_i32 = arith.constant 0 : i32
    %c0_i32_0 = arith.constant 0 : i32
    %c0_i32_1 = arith.constant 0 : i32
    return %c0_i32, %c0_i32_0 : i32, i32
  }
  func.func @transform_5(%arg0: i32) -> (i32, i32) {
    %c0_i32 = arith.constant 0 : i32
    %c0_i32_0 = arith.constant 0 : i32
    %c0_i32_1 = arith.constant 0 : i32
    return %c0_i32, %c0_i32_0 : i32, i32
  }
  func.func @transform_6(%arg0: i32) -> (i32, i32) {
    %c0_i32 = arith.constant 0 : i32
    %c0_i32_0 = arith.constant 0 : i32
    %c0_i32_1 = arith.constant 0 : i32
    return %c0_i32, %c0_i32_0 : i32, i32
  }
  func.func @transform_7(%arg0: i32) -> (i32, i32) {
    %c0_i32 = arith.constant 0 : i32
    %c0_i32_0 = arith.constant 0 : i32
    return %c0_i32, %arg0 : i32, i32
  }
}

</mosaic_0001>

<bundles_post_ra>
// kernel: tpu_custom_call.1
= control target key start
LH: loop header
LB: loop body
LE: loop exit
PB: predicated region body
PF: predicated region fallthrough
CT: control target
= control target key end

     0   :  { %s6131_s0 = inlined_call_operand.vmem [shape: f32[256,32], index: 0, kind: input, shape index: {}]   ;;  %s6132_s1 = inlined_call_operand.vmem [shape: f32[32,256], index: 1, kind: input, shape index: {}]   ;;  %s6133_s2 = inlined_call_operand.vmem [shape: f32[1,256], index: 2, kind: input, shape index: {}]   ;;  %s6134_s3 = inlined_call_operand.hbm [shape: f32[256,256], index: 3, kind: input, shape index: {}]   ;;  %s6135_s4 = inlined_call_operand.vmem [shape: f32[1,256], index: 4, kind: input, shape index: {}]   ;;  %s6136_s5 = inlined_call_operand.vmem [shape: f32[1,256], index: 5, kind: input, shape index: {}]   ;;  %s6137_s6 = inlined_call_operand.<no memory space> [shape: f32[1,1], index: 6, kind: input, shape index: {}]   ;;  %s6138_s7 = inlined_call_operand.hbm [shape: f32[1,256], index: 7, kind: output, shape index: {}]  }
   0x1   :  { %v12_v0 = vstv %s6137_s6 }
   0x2   :  { %13 = vst [vmem:[#allocation2] sm:$0x1] %v12_v0 }
   0x3   :  { %14 = vsyncpa [#allocation4], 0 }
   0x4   :  { %15 = vsyncpa [#allocation5], 0  ;;  %s4570_s26 = smov [#allocation3]   ;;  %s4522_s30 = scalar_lea.hbm %s6134_s3, 8192 }
   0x5   :  { %s27_s27 = sshll.u32 %s4570_s26, 4  ;;  %p4523_p0 = scmp.ne.s32.totalorder %s6134_s3, %s4522_s30  ;;  %s28_s27 = int_to_ptr.vmem [resolvable:$true] %s27_s27 }
   0x6   :  { %p4526_p1 = scmp.lt.u32.totalorder %s4522_s30, %s6134_s3 }
   0x8   :  { %p4528_p2 = pnand %p4526_p1, %p4523_p0 }
   0xa   :  { %4531 = shalt.err (!%p4528_p2)
}
   0xb   :  { %s4532_s6 = scalar_lea.vmem %s28_s27, 8192  ;;  %p4537_p4 = scmp.lt.s32.totalorder %s28_s27, %s28_s27 }
   0xc   :  { %p4533_p3 = scmp.ne.s32.totalorder %s28_s27, %s4532_s6  ;;  %p4538_p5 = scmp.lt.s32.totalorder %s4532_s6, %s4532_s6 }
   0xe   :  { %p4539_p6 = por %p4538_p5, %p4537_p4 }
  0x10   :  { %p4540_p7 = pnand %p4539_p6, %p4533_p3 }
  0x12   :  { %4543 = shalt.err (!%p4540_p7)
}
  0x13   :  { %s4571_s12 = smov 256   ;;  %s4572_s13 = smov 16  }
  0x14   :  { %33 = dma.hbm_to_vmem [thread:$0]  %s6134_s3, 8192, %s28_s27, [#allocation4], %s4571_s12, %s4571_s12, %s4572_s13  }
  0x15   :  { %4566 = dma.done.wait [#allocation4], 8192  }
  0x16   :  { %4567 = vsyncadd [#allocation4], 4294959104  ;;  %v4573_v1 = vmov 0.0   ;;  %v64_v2 = vld [vmem:[%s6132_s1 + $0x8] sm:$0xff]  ;;  %v66_v3 = vld [vmem:[%s6132_s1 + $0x18] sm:$0xff]  ;;  %vm82_vm0 = vcmask 261120  }
  0x17   :  { %195 = vmatprep.mubr.f32.mxu0 %v4573_v1  ;;  %v63_v4 = vld [vmem:[%s6132_s1] sm:$0xff]  ;;  %v4337_v5 = vpack.c.bf16 %v66_v3, %v64_v2  ;;  %v65_v6 = vld [vmem:[%s6132_s1 + $0x10] sm:$0xff]  ;;  %v68_v7 = vld [vmem:[%s6132_s1 + $0x28] sm:$0xff]  ;;  %vm2079_vm1 = vcmask 130112   ;;  %vm2086_vm2 = vcmask 195712   ;;  %vm2093_vm3 = vcmask 261312  }
  0x18   :  { %v70_v8 = vld [vmem:[%s6132_s1 + $0x38] sm:$0xff]  ;;  %v4339_v9 = vpack.c.bf16 %v65_v6, %v63_v4  ;;  %v67_v11 = vld [vmem:[%s6132_s1 + $0x20] sm:$0xff]  ;;  %v69_v12 = vld [vmem:[%s6132_s1 + $0x30] sm:$0xff]  ;;  %vm2100_vm4 = vcmask 326912   ;;  %vm2107_vm5 = vcmask 392512   ;;  %vm2114_vm6 = vcmask 458112  }
  0x19   :  { %v4341_v10 = vpack.c.bf16 %v70_v8, %v68_v7  ;;  %4338 = vmatprep.subr.bf16.mxu0 %v4337_v5  ;;  %v4343_v13 = vpack.c.bf16 %v69_v12, %v67_v11  ;;  %v47_v14 = vld [vmem:[%s6131_s0] sm:$0xff]  ;;  %v48_v15 = vld [vmem:[%s6131_s0 + $0x8] sm:$0xff]  ;;  %v326_v20 = vld [vmem:[#allocation3 + $0x10] sm:$0xff]  ;;  %vm2121_vm7 = vcmask 523712   ;;  %vm2128_vm8 = vcmask 589312  }
  0x1a   :  { %4340 = vmatpush1.bf16.msra.mxu0 %v4339_v9  ;;  %v325_v16 = vld [vmem:[#allocation3 + $0x8] sm:$0xff]  ;;  %v327_v17 = vld [vmem:[#allocation3 + $0x18] sm:$0xff]  ;;  %v324_v19 = vld [vmem:[#allocation3] sm:$0xff]  ;;  %vm2135_vm9 = vcmask 654912   ;;  %vm2142_vm10 = vcmask 720512   ;;  %vm2149_vm11 = vcmask 786112  }
  0x1b   :  { %4342 = vmatprep.subr.bf16.mxu0 %v4341_v10  ;;  %v4665_v18 = vpack.c.bf16 %v327_v17, %v325_v16  ;;  %v329_v21 = vld [vmem:[#allocation3 + $0x28] sm:$0xff]  ;;  %v4668_v22 = vpack.c.bf16 %v326_v20, %v324_v19  ;;  %v331_v23 = vld [vmem:[#allocation3 + $0x38] sm:$0xff]  ;;  %v328_v24 = vld [vmem:[#allocation3 + $0x20] sm:$0xff]  ;;  %vm2156_vm12 = vcmask 851712   ;;  %vm2163_vm13 = vcmask 917312  }
  0x1c   :  { %v330_v25 = vld [vmem:[#allocation3 + $0x30] sm:$0xff]  ;;  %v4674_v27 = vpack.c.bf16 %v331_v23, %v329_v21  ;;  %v333_v28 = vld [vmem:[#allocation3 + $0x48] sm:$0xff]  ;;  %v335_v29 = vld [vmem:[#allocation3 + $0x58] sm:$0xff]  ;;  %vm2170_vm14 = vcmask 982912   ;;  %vm2177_vm15 = vcmask 1048512  }
  0x1d   :  { %v49_v26 = vld [vmem:[%s6131_s0 + $0x10] sm:$0xff]  ;;  %4346 = vmatprep.subr.bf16.mxu1 %v4665_v18  ;;  %v4679_v30 = vpack.c.bf16 %v330_v25, %v328_v24  ;;  %v4683_v31 = vpack.c.bf16 %v335_v29, %v333_v28  ;;  %v332_v32 = vld [vmem:[#allocation3 + $0x40] sm:$0xff]  ;;  %v50_v34 = vld [vmem:[%s6131_s0 + $0x18] sm:$0xff] }
  0x1e   :  { %4344 = vmatpush1.bf16.msra.mxu0 %v4343_v13  ;;  %4348 = vmatpush1.bf16.msra.mxu1 %v4668_v22  ;;  %v334_v33 = vld [vmem:[#allocation3 + $0x50] sm:$0xff]  ;;  %v337_v35 = vld [vmem:[#allocation3 + $0x68] sm:$0xff]  ;;  %v339_v36 = vld [vmem:[#allocation3 + $0x78] sm:$0xff] }
  0x1f   :  { %4410 = vmatprep.subr.bf16.mxu0 %v4337_v5  ;;  %4350 = vmatprep.subr.bf16.mxu1 %v4674_v27  ;;  %v4690_v37 = vpack.c.bf16 %v334_v33, %v332_v32  ;;  %v4694_v38 = vpack.c.bf16 %v339_v36, %v337_v35  ;;  %v336_v39 = vld [vmem:[#allocation3 + $0x60] sm:$0xff]  ;;  %v338_v40 = vld [vmem:[#allocation3 + $0x70] sm:$0xff]  ;;  %v341_v42 = vld [vmem:[#allocation3 + $0x88] sm:$0xff] }
  0x20   :  { %v51_v41 = vld [vmem:[%s6131_s0 + $0x20] sm:$0xff]  ;;  %v4701_v44 = vpack.c.bf16 %v338_v40, %v336_v39  ;;  %v342_v47 = vld [vmem:[#allocation3 + $0x90] sm:$0xff]  ;;  %v52_v48 = vld [vmem:[%s6131_s0 + $0x28] sm:$0xff] }
  0x21   :  { %4289 = vmatmul.mubr.msk.f32.vlgmr.msra.gmra.mrb[0].mxu0 %vm82_vm0, %v47_v14  ;;  %v343_v43 = vld [vmem:[#allocation3 + $0x98] sm:$0xff]  ;;  %v340_v46 = vld [vmem:[#allocation3 + $0x80] sm:$0xff]  ;;  %v345_v49 = vld [vmem:[#allocation3 + $0xa8] sm:$0xff] }
  0x22   :  { %4412 = vmatpush1.bf16.msra.mxu0 %v4339_v9  ;;  %201 = vmatprep.mubr.f32.mxu0 %v4573_v1  ;;  %v4705_v45 = vpack.c.bf16 %v343_v43, %v341_v42  ;;  %v347_v50 = vld [vmem:[#allocation3 + $0xb8] sm:$0xff]  ;;  %v4712_v51 = vpack.c.bf16 %v342_v47, %v340_v46  ;;  %v344_v53 = vld [vmem:[#allocation3 + $0xa0] sm:$0xff]  ;;  %v346_v54 = vld [vmem:[#allocation3 + $0xb0] sm:$0xff] }
  0x23   :  { %4414 = vmatprep.subr.bf16.mxu0 %v4341_v10  ;;  %4352 = vmatpush1.bf16.msra.mxu1 %v4679_v30  ;;  %v4716_v52 = vpack.c.bf16 %v347_v50, %v345_v49  ;;  %v53_v55 = vld [vmem:[%s6131_s0 + $0x30] sm:$0xff]  ;;  %v351_v57 = vld [vmem:[#allocation3 + $0xd8] sm:$0xff]  ;;  %v4723_v58 = vpack.c.bf16 %v346_v54, %v344_v53  ;;  %v348_v60 = vld [vmem:[#allocation3 + $0xc0] sm:$0xff] }
  0x24   :  { %4354 = vmatprep.subr.bf16.mxu1 %v4683_v31  ;;  %v349_v56 = vld [vmem:[#allocation3 + $0xc8] sm:$0xff]  ;;  %v350_v61 = vld [vmem:[#allocation3 + $0xd0] sm:$0xff]  ;;  %v355_v0 = vld [vmem:[#allocation3 + $0xf8] sm:$0xff] }
  0x25   :  { %4290 = vmatmul.mubr.msk.f32.gmra.mrb[2].mxu0 %vm82_vm0, %v48_v15  ;;  %v4727_v59 = vpack.c.bf16 %v351_v57, %v349_v56  ;;  %v54_v62 = vld [vmem:[%s6131_s0 + $0x38] sm:$0xff]  ;;  %v353_v63 = vld [vmem:[#allocation3 + $0xe8] sm:$0xff]  ;;  %v4734_v2 = vpack.c.bf16 %v350_v61, %v348_v60  ;;  %v352_v4 = vld [vmem:[#allocation3 + $0xe0] sm:$0xff] }
  0x26   :  { %207 = vmatprep.mubr.f32.mxu0 %v4573_v1  ;;  %4416 = vmatpush1.bf16.msra.mxu0 %v4343_v13  ;;  %v4738_v3 = vpack.c.bf16 %v355_v0, %v353_v63  ;;  %v354_v5 = vld [vmem:[#allocation3 + $0xf0] sm:$0xff]  ;;  %v55_v6 = vld [vmem:[%s6131_s0 + $0x40] sm:$0xff]  ;;  %v357_v7 = vld [vmem:[#allocation3 + $0x108] sm:$0xff] }
  0x27   :  { %4418 = vmatprep.subr.bf16.mxu0 %v4665_v18  ;;  %4356 = vmatpush1.bf16.msra.mxu1 %v4690_v37  ;;  %v359_v8 = vld [vmem:[#allocation3 + $0x118] sm:$0xff]  ;;  %v4745_v9 = vpack.c.bf16 %v354_v5, %v352_v4  ;;  %v356_v11 = vld [vmem:[#allocation3 + $0x100] sm:$0xff]  ;;  %v358_v12 = vld [vmem:[#allocation3 + $0x110] sm:$0xff] }
  0x28   :  { %4358 = vmatprep.subr.bf16.mxu1 %v4694_v38  ;;  %v4749_v10 = vpack.c.bf16 %v359_v8, %v357_v7  ;;  %v56_v13 = vld [vmem:[%s6131_s0 + $0x48] sm:$0xff]  ;;  %v363_v15 = vld [vmem:[#allocation3 + $0x138] sm:$0xff]  ;;  %v4756_v16 = vpack.c.bf16 %v358_v12, %v356_v11  ;;  %v362_v20 = vld [vmem:[#allocation3 + $0x130] sm:$0xff] }
  0x29   :  { %4291 = vmatmul.mubr.msk.f32.gmra.mrb[4].mxu0 %vm82_vm0, %v49_v26  ;;  %v361_v14 = vld [vmem:[#allocation3 + $0x128] sm:$0xff]  ;;  %v360_v19 = vld [vmem:[#allocation3 + $0x120] sm:$0xff]  ;;  %v367_v24 = vld [vmem:[#allocation3 + $0x158] sm:$0xff] }
  0x2a   :  { %213 = vmatprep.mubr.f32.mxu0 %v4573_v1  ;;  %v4760_v17 = vpack.c.bf16 %v363_v15, %v361_v14  ;;  %v57_v21 = vld [vmem:[%s6131_s0 + $0x50] sm:$0xff]  ;;  %v4767_v25 = vpack.c.bf16 %v362_v20, %v360_v19  ;;  %v364_v28 = vld [vmem:[#allocation3 + $0x140] sm:$0xff]  ;;  %v58_v32 = vld [vmem:[%s6131_s0 + $0x58] sm:$0xff] }
  0x2b   :  { %4360 = vmatpush1.bf16.msra.mxu1 %v4701_v44  ;;  %v365_v23 = vld [vmem:[#allocation3 + $0x148] sm:$0xff]  ;;  %v366_v29 = vld [vmem:[#allocation3 + $0x150] sm:$0xff]  ;;  %v368_v39 = vld [vmem:[#allocation3 + $0x160] sm:$0xff] }
  0x2c   :  { %4362 = vmatprep.subr.bf16.mxu1 %v4705_v45  ;;  %v4771_v26 = vpack.c.bf16 %v367_v24, %v365_v23  ;;  %v369_v33 = vld [vmem:[#allocation3 + $0x168] sm:$0xff]  ;;  %v4778_v35 = vpack.c.bf16 %v366_v29, %v364_v28  ;;  %v370_v40 = vld [vmem:[#allocation3 + $0x170] sm:$0xff]  ;;  %v375_v43 = vld [vmem:[#allocation3 + $0x198] sm:$0xff] }
  0x2d   :  { %4292 = vmatmul.mubr.msk.f32.gmra.mrb[6].mxu0 %vm82_vm0, %v50_v34  ;;  %v371_v34 = vld [vmem:[#allocation3 + $0x178] sm:$0xff]  ;;  %v373_v42 = vld [vmem:[#allocation3 + $0x188] sm:$0xff]  ;;  %v4789_v46 = vpack.c.bf16 %v370_v40, %v368_v39  ;;  %v374_v49 = vld [vmem:[#allocation3 + $0x190] sm:$0xff] }
  0x2e   :  { %219 = vmatprep.mubr.f32.mxu0 %v4573_v1  ;;  %v4782_v36 = vpack.c.bf16 %v371_v34, %v369_v33  ;;  %v4793_v47 = vpack.c.bf16 %v375_v43, %v373_v42  ;;  %v60_v50 = vld [vmem:[%s6131_s0 + $0x68] sm:$0xff]  ;;  %v379_v54 = vld [vmem:[#allocation3 + $0x1b8] sm:$0xff]  ;;  %v378_v60 = vld [vmem:[#allocation3 + $0x1b0] sm:$0xff] }
  0x2f   :  { %4364 = vmatpush1.bf16.msra.mxu1 %v4712_v51  ;;  %v377_v53 = vld [vmem:[#allocation3 + $0x1a8] sm:$0xff]  ;;  %v376_v57 = vld [vmem:[#allocation3 + $0x1a0] sm:$0xff]  ;;  %v383_v63 = vld [vmem:[#allocation3 + $0x1d8] sm:$0xff] }
  0x30   :  { %4366 = vmatprep.subr.bf16.mxu1 %v4716_v52  ;;  %v4804_v56 = vpack.c.bf16 %v379_v54, %v377_v53  ;;  %v61_v61 = vld [vmem:[%s6131_s0 + $0x70] sm:$0xff]  ;;  %v4811_v0 = vpack.c.bf16 %v378_v60, %v376_v57  ;;  %v62_v5 = vld [vmem:[%s6131_s0 + $0x78] sm:$0xff]  ;;  %v4306_v7 = vld [vmem:[%s6131_s0 + $0x88] sm:$0xff] }
  0x31   :  { %4293 = vmatmul.mubr.msk.f32.gmra.mrb[8].mxu0 %vm82_vm0, %v51_v41  ;;  %v59_v41 = vld [vmem:[%s6131_s0 + $0x60] sm:$0xff]  ;;  %v4307_v8 = vld [vmem:[%s6131_s0 + $0x90] sm:$0xff]  ;;  %v4308_v11 = vld [vmem:[%s6131_s0 + $0x98] sm:$0xff] }
  0x32   :  { %225 = vmatprep.mubr.f32.mxu0 %v4573_v1  ;;  %v4309_v12 = vld [vmem:[%s6131_s0 + $0xa0] sm:$0xff]  ;;  %v382_v14 = vld [vmem:[#allocation3 + $0x1d0] sm:$0xff]  ;;  %v4310_v15 = vld [vmem:[%s6131_s0 + $0xa8] sm:$0xff] }
  0x33   :  { %4368 = vmatpush1.bf16.msra.mxu1 %v4723_v58  ;;  %v385_v20 = vld [vmem:[#allocation3 + $0x1e8] sm:$0xff]  ;;  %v384_v24 = vld [vmem:[#allocation3 + $0x1e0] sm:$0xff]  ;;  %v386_v28 = vld [vmem:[#allocation3 + $0x1f0] sm:$0xff] }
  0x34   :  { %4370 = vmatprep.subr.bf16.mxu1 %v4727_v59  ;;  %v4311_v29 = vld [vmem:[%s6131_s0 + $0xb0] sm:$0xff]  ;;  %v4312_v33 = vld [vmem:[%s6131_s0 + $0xb8] sm:$0xff]  ;;  %v4313_v34 = vld [vmem:[%s6131_s0 + $0xc0] sm:$0xff] }
  0x35   :  { %4294 = vmatmul.mubr.msk.f32.gmra.mrb[10].mxu0 %vm82_vm0, %v52_v48  ;;  %v372_v48 = vld [vmem:[#allocation3 + $0x180] sm:$0xff]  ;;  %v4315_v39 = vld [vmem:[%s6131_s0 + $0xd0] sm:$0xff]  ;;  %v4316_v40 = vld [vmem:[%s6131_s0 + $0xd8] sm:$0xff] }
  0x36   :  { %231 = vmatprep.mubr.f32.mxu0 %v4573_v1  ;;  %v4318_v42 = vld [vmem:[%s6131_s0 + $0xe8] sm:$0xff]  ;;  %v4319_v43 = vld [vmem:[%s6131_s0 + $0xf0] sm:$0xff] }
  0x37   :  { %4372 = vmatpush1.bf16.msra.mxu1 %v4734_v2 }
  0x38   :  { %4374 = vmatprep.subr.bf16.mxu1 %v4738_v3 }
  0x39   :  { %4295 = vmatmul.mubr.msk.f32.gmra.mrb[12].mxu0 %vm82_vm0, %v53_v55  ;;  %v4800_v55 = vpack.c.bf16 %v374_v49, %v372_v48  ;;  %v4320_v48 = vld [vmem:[%s6131_s0 + $0xf8] sm:$0xff]  ;;  %v72_v49 = vlaneseq }
  0x3a   :  { %237 = vmatprep.mubr.f32.mxu0 %v4573_v1 }
  0x3b   :  { %4376 = vmatpush1.bf16.msra.mxu1 %v4745_v9 }
  0x3c   :  { %4378 = vmatprep.subr.bf16.mxu1 %v4749_v10 }
  0x3d   :  { %4296 = vmatmul.mubr.msk.f32.gmra.mrb[14].mxu0 %vm82_vm0, %v54_v62  ;;  %v381_v62 = vld [vmem:[#allocation3 + $0x1c8] sm:$0xff] }
  0x3e   :  { %243 = vmatprep.mubr.f32.mxu0 %v4573_v1  ;;  %v4815_v4 = vpack.c.bf16 %v383_v63, %v381_v62 }
  0x3f   :  { %4380 = vmatpush1.bf16.msra.mxu1 %v4756_v16 }
  0x40   :  { %4382 = vmatprep.subr.bf16.mxu1 %v4760_v17 }
  0x41   :  { %4297 = vmatmul.mubr.msk.f32.gmra.mrb[16].mxu0 %vm82_vm0, %v55_v6  ;;  %v4305_v6 = vld [vmem:[%s6131_s0 + $0x80] sm:$0xff] }
  0x42   :  { %249 = vmatprep.mubr.f32.mxu0 %v4573_v1 }
  0x43   :  { %4384 = vmatpush1.bf16.msra.mxu1 %v4767_v25 }
  0x44   :  { %4386 = vmatprep.subr.bf16.mxu1 %v4771_v26 }
  0x45   :  { %4298 = vmatmul.mubr.msk.f32.gmra.mrb[18].mxu0 %vm82_vm0, %v56_v13  ;;  %v380_v13 = vld [vmem:[#allocation3 + $0x1c0] sm:$0xff] }
  0x46   :  { %255 = vmatprep.mubr.f32.mxu0 %v4573_v1  ;;  %v4861_v19 = vpack.c.bf16 %v382_v14, %v380_v13 }
  0x47   :  { %4388 = vmatpush1.bf16.msra.mxu1 %v4778_v35 }
  0x48   :  { %4390 = vmatprep.subr.bf16.mxu1 %v4782_v36 }
  0x49   :  { %4299 = vmatmul.mubr.msk.f32.gmra.mrb[20].mxu0 %vm82_vm0, %v57_v21  ;;  %v387_v21 = vld [vmem:[#allocation3 + $0x1f8] sm:$0xff] }
  0x4a   :  { %261 = vmatprep.mubr.f32.mxu0 %v4573_v1  ;;  %v4867_v23 = vpack.c.bf16 %v387_v21, %v385_v20 }
  0x4b   :  { %4392 = vmatpush1.bf16.msra.mxu1 %v4789_v46 }
  0x4c   :  { %4394 = vmatprep.subr.bf16.mxu1 %v4793_v47 }
  0x4d   :  { %4300 = vmatmul.mubr.msk.f32.gmra.mrb[22].mxu0 %vm82_vm0, %v58_v32  ;;  %v4873_v32 = vpack.c.bf16 %v386_v28, %v384_v24 }
  0x4e   :  { %267 = vmatprep.mubr.f32.mxu0 %v4573_v1 }
  0x4f   :  { %4396 = vmatpush1.bf16.msra.mxu1 %v4800_v55 }
  0x50   :  { %4398 = vmatprep.subr.bf16.mxu1 %v4804_v56 }
  0x51   :  { %4301 = vmatmul.mubr.msk.f32.gmra.mrb[24].mxu0 %vm82_vm0, %v59_v41  ;;  %v4317_v41 = vld [vmem:[%s6131_s0 + $0xe0] sm:$0xff] }
  0x52   :  { %273 = vmatprep.mubr.f32.mxu0 %v4573_v1 }
  0x53   :  { %4400 = vmatpush1.bf16.msra.mxu1 %v4811_v0 }
  0x54   :  { %4402 = vmatprep.subr.bf16.mxu1 %v4815_v4 }
  0x55   :  { %4302 = vmatmul.mubr.msk.f32.gmra.mrb[26].mxu0 %vm82_vm0, %v60_v50  ;;  %v4946_v50 = vshrl.u32 %v72_v49, 7 }
  0x56   :  { %279 = vmatprep.mubr.f32.mxu0 %v4573_v1 }
  0x57   :  { %4404 = vmatpush1.bf16.msra.mxu1 %v4861_v19  ;;  %v4949_v53 = vsub.s32 0, %v4946_v50  ;;  %v4955_v54 = vsub.s32 1, %v4946_v50 }
  0x58   :  { %4406 = vmatprep.subr.bf16.mxu1 %v4867_v23 }
  0x59   :  { %4303 = vmatmul.mubr.msk.f32.gmra.mrb[28].mxu0 %vm82_vm0, %v61_v61 }
  0x5a   :  { %285 = vmatprep.mubr.f32.mxu0 %v4573_v1 }
  0x5b   :  { %4408 = vmatpush1.bf16.msra.mxu1 %v4873_v32 }
  0x5c   :  { %4481 = vmatprep.subr.bf16.mxu1 %v4665_v18  ;;  %v4314_v18 = vld [vmem:[%s6131_s0 + $0xc8] sm:$0xff] }
  0x5d   :  { %4304 = vmatmul.mubr.msk.f32.gmra.mrb[30].mxu0 %vm82_vm0, %v62_v5 }
  0x5e   :  { %2336 = vmatprep.mubr.f32.mxu0 %v4573_v1 }
  0x61   :  { %4321 = vmatmul.mubr.msk.f32.vlgmr.msra.gmra.mrb[32].mxu0 %vm82_vm0, %v4305_v6  ;;  %v46_v6 = vld [vmem:[#allocation2] sm:$0x1] }
  0x62   :  { %2342 = vmatprep.mubr.f32.mxu0 %v4573_v1  ;;  %4420 = vmatpush1.bf16.msra.mxu0 %v4668_v22 }
  0x63   :  { %4422 = vmatprep.subr.bf16.mxu0 %v4674_v27 }
  0x65   :  { %4322 = vmatmul.mubr.msk.f32.gmra.mrb[34].mxu0 %vm82_vm0, %v4306_v7 }
  0x66   :  { %2348 = vmatprep.mubr.f32.mxu0 %v4573_v1  ;;  %4424 = vmatpush1.bf16.msra.mxu0 %v4679_v30 }
  0x67   :  { %4426 = vmatprep.subr.bf16.mxu0 %v4683_v31 }
  0x69   :  { %4323 = vmatmul.mubr.msk.f32.gmra.mrb[36].mxu0 %vm82_vm0, %v4307_v8 }
  0x6a   :  { %2354 = vmatprep.mubr.f32.mxu0 %v4573_v1  ;;  %4428 = vmatpush1.bf16.msra.mxu0 %v4690_v37 }
  0x6b   :  { %4430 = vmatprep.subr.bf16.mxu0 %v4694_v38 }
  0x6d   :  { %4324 = vmatmul.mubr.msk.f32.gmra.mrb[38].mxu0 %vm82_vm0, %v4308_v11  ;;  %v4574_v11 = vmov 0  }
  0x6e   :  { %2360 = vmatprep.mubr.f32.mxu0 %v4573_v1  ;;  %4432 = vmatpush1.bf16.msra.mxu0 %v4701_v44 }
  0x6f   :  { %4434 = vmatprep.subr.bf16.mxu0 %v4705_v45  ;;  %4520 = vset.pattern.permute.xlu0 %v4574_v11 }
  0x70   :  { %4521 = vset.pattern.permute.xlu1 %v4574_v11  ;;  %685 = vperm.xlu0 %4520, %v46_v6  }
  0x71   :  { %4325 = vmatmul.mubr.msk.f32.gmra.mrb[40].mxu0 %vm82_vm0, %v4309_v12 }
  0x72   :  { %2366 = vmatprep.mubr.f32.mxu0 %v4573_v1  ;;  %4436 = vmatpush1.bf16.msra.mxu0 %v4712_v51 }
  0x73   :  { %4438 = vmatprep.subr.bf16.mxu0 %v4716_v52 }
  0x75   :  { %4326 = vmatmul.mubr.msk.f32.gmra.mrb[42].mxu0 %vm82_vm0, %v4310_v15 }
  0x76   :  { %2372 = vmatprep.mubr.f32.mxu0 %v4573_v1  ;;  %4440 = vmatpush1.bf16.msra.mxu0 %v4723_v58 }
  0x77   :  { %4442 = vmatprep.subr.bf16.mxu0 %v4727_v59 }
  0x79   :  { %4327 = vmatmul.mubr.msk.f32.gmra.mrb[44].mxu0 %vm82_vm0, %v4311_v29 }
  0x7a   :  { %2378 = vmatprep.mubr.f32.mxu0 %v4573_v1  ;;  %4444 = vmatpush1.bf16.msra.mxu0 %v4734_v2 }
  0x7b   :  { %4446 = vmatprep.subr.bf16.mxu0 %v4738_v3 }
  0x7d   :  { %4328 = vmatmul.mubr.msk.f32.gmra.mrb[46].mxu0 %vm82_vm0, %v4312_v33 }
  0x7e   :  { %2384 = vmatprep.mubr.f32.mxu0 %v4573_v1  ;;  %4448 = vmatpush1.bf16.msra.mxu0 %v4745_v9 }
  0x7f   :  { %4450 = vmatprep.subr.bf16.mxu0 %v4749_v10 }
  0x81   :  { %4329 = vmatmul.mubr.msk.f32.gmra.mrb[48].mxu0 %vm82_vm0, %v4313_v34 }
  0x82   :  { %2390 = vmatprep.mubr.f32.mxu0 %v4573_v1  ;;  %4452 = vmatpush1.bf16.msra.mxu0 %v4756_v16 }
  0x83   :  { %4454 = vmatprep.subr.bf16.mxu0 %v4760_v17 }
  0x85   :  { %4330 = vmatmul.mubr.msk.f32.gmra.mrb[50].mxu0 %vm82_vm0, %v4314_v18 }
  0x86   :  { %2396 = vmatprep.mubr.f32.mxu0 %v4573_v1  ;;  %4456 = vmatpush1.bf16.msra.mxu0 %v4767_v25 }
  0x87   :  { %4458 = vmatprep.subr.bf16.mxu0 %v4771_v26 }
  0x89   :  { %4331 = vmatmul.mubr.msk.f32.gmra.mrb[52].mxu0 %vm82_vm0, %v4315_v39 }
  0x8a   :  { %2402 = vmatprep.mubr.f32.mxu0 %v4573_v1  ;;  %4460 = vmatpush1.bf16.msra.mxu0 %v4778_v35 }
  0x8b   :  { %4462 = vmatprep.subr.bf16.mxu0 %v4782_v36 }
  0x8d   :  { %4332 = vmatmul.mubr.msk.f32.gmra.mrb[54].mxu0 %vm82_vm0, %v4316_v40 }
  0x8e   :  { %2408 = vmatprep.mubr.f32.mxu0 %v4573_v1  ;;  %4464 = vmatpush1.bf16.msra.mxu0 %v4789_v46 }
  0x8f   :  { %4466 = vmatprep.subr.bf16.mxu0 %v4793_v47 }
  0x91   :  { %4333 = vmatmul.mubr.msk.f32.gmra.mrb[56].mxu0 %vm82_vm0, %v4317_v41 }
  0x92   :  { %2414 = vmatprep.mubr.f32.mxu0 %v4573_v1  ;;  %4468 = vmatpush1.bf16.msra.mxu0 %v4800_v55 }
  0x93   :  { %4470 = vmatprep.subr.bf16.mxu0 %v4804_v56 }
  0x95   :  { %4334 = vmatmul.mubr.msk.f32.gmra.mrb[58].mxu0 %vm82_vm0, %v4318_v42 }
  0x96   :  { %2420 = vmatprep.mubr.f32.mxu0 %v4573_v1  ;;  %4472 = vmatpush1.bf16.msra.mxu0 %v4811_v0 }
  0x97   :  { %4474 = vmatprep.subr.bf16.mxu0 %v4815_v4 }
  0x99   :  { %4335 = vmatmul.mubr.msk.f32.gmra.mrb[60].mxu0 %vm82_vm0, %v4319_v43 }
  0x9a   :  { %2426 = vmatprep.mubr.f32.mxu0 %v4573_v1  ;;  %4476 = vmatpush1.bf16.msra.mxu0 %v4861_v19  ;;  %v43_v1 = vld [vmem:[%s6133_s2] sm:$0x3] }
  0x9b   :  { %4478 = vmatprep.subr.bf16.mxu0 %v4867_v23  ;;  %v4958_v57 = vrot.slane %v43_v1, %v4949_v53  ;;  %v4961_v60 = vrot.slane %v43_v1, %v4955_v54 }
  0x9d   :  { %4336 = vmatmul.mubr.msk.f32.gmra.mrb[62].mxu0 %vm82_vm0, %v4320_v48  ;;  %vm6070_vm0 = vcmp.lt.s32.totalorder %v72_v49, 128 }
  0x9e   :  { %4480 = vmatpush1.bf16.msra.mxu0 %v4873_v32 }
  0xf4   :  { %v197_v61 = vpop.f32.mrb[0].mxu0 }
  0xf5   :  { %v198_v62 = vadd.f32 %v197_v61, %v4958_v57  ;;  %v199_v63 = vpop.f32.mrb[1].mxu0 }
  0xf6   :  { %v200_v5 = vadd.f32 %v199_v63, %v4961_v60 }
  0xf7   :  { %v292_v12 = vmax.f32 %v198_v62, 0.0 }
  0xf8   :  { %v203_v7 = vpop.f32.mrb[2].mxu0  ;;  %v293_v8 = vmax.f32 %v200_v5, 0.0 }
  0xf9   :  { %v204_v13 = vadd.f32 %v203_v7, %v4958_v57  ;;  %v205_v14 = vpop.f32.mrb[3].mxu0 }
  0xfa   :  { %v206_v15 = vadd.f32 %v205_v14, %v4961_v60  ;;  %463 = vmatprep.mubr.f32.mxu1 %v293_v8 }
  0xfb   :  { %464 = vmatmul.mubr.f32.vlgmr.msra.gmra.mrb[0].mxu1 %v292_v12  ;;  %v294_v24 = vmax.f32 %v204_v13, 0.0 }
  0xfc   :  { %v295_v20 = vmax.f32 %v206_v15, 0.0  ;;  %v209_v21 = vpop.f32.mrb[4].mxu0  ;;  %4497 = vmatpush1.bf16.msra.mxu1 %v4668_v22 }
  0xfd   :  { %v210_v28 = vadd.f32 %v209_v21, %v4958_v57  ;;  %v211_v29 = vpop.f32.mrb[5].mxu0  ;;  %4482 = vmatprep.subr.bf16.mxu1 %v4674_v27 }
  0xfe   :  { %v212_v33 = vadd.f32 %v211_v29, %v4961_v60  ;;  %469 = vmatprep.mubr.f32.mxu1 %v295_v20 }
  0xff   :  { %470 = vmatmul.mubr.f32.gmra.mrb[2].mxu1 %v294_v24  ;;  %v296_v39 = vmax.f32 %v210_v28, 0.0 }
 0x100   :  { %v297_v34 = vmax.f32 %v212_v33, 0.0  ;;  %v215_v18 = vpop.f32.mrb[6].mxu0  ;;  %4498 = vmatpush1.bf16.msra.mxu1 %v4679_v30 }
 0x101   :  { %v216_v40 = vadd.f32 %v215_v18, %v4958_v57  ;;  %v217_v41 = vpop.f32.mrb[7].mxu0  ;;  %4483 = vmatprep.subr.bf16.mxu1 %v4683_v31 }
 0x102   :  { %v218_v22 = vadd.f32 %v217_v41, %v4961_v60  ;;  %475 = vmatprep.mubr.f32.mxu1 %v297_v34 }
 0x103   :  { %476 = vmatmul.mubr.f32.gmra.mrb[4].mxu1 %v296_v39  ;;  %v298_v43 = vmax.f32 %v216_v40, 0.0 }
 0x104   :  { %v299_v42 = vmax.f32 %v218_v22, 0.0  ;;  %v221_v27 = vpop.f32.mrb[8].mxu0  ;;  %4499 = vmatpush1.bf16.msra.mxu1 %v4690_v37 }
 0x105   :  { %v222_v48 = vadd.f32 %v221_v27, %v4958_v57  ;;  %v223_v1 = vpop.f32.mrb[9].mxu0  ;;  %4484 = vmatprep.subr.bf16.mxu1 %v4694_v38 }
 0x106   :  { %v224_v30 = vadd.f32 %v223_v1, %v4961_v60  ;;  %481 = vmatprep.mubr.f32.mxu1 %v299_v42 }
 0x107   :  { %482 = vmatmul.mubr.f32.gmra.mrb[6].mxu1 %v298_v43  ;;  %v300_v62 = vmax.f32 %v222_v48, 0.0 }
 0x108   :  { %v301_v61 = vmax.f32 %v224_v30, 0.0  ;;  %v227_v31 = vpop.f32.mrb[10].mxu0  ;;  %4500 = vmatpush1.bf16.msra.mxu1 %v4701_v44 }
 0x109   :  { %v228_v63 = vadd.f32 %v227_v31, %v4958_v57  ;;  %v229_v5 = vpop.f32.mrb[11].mxu0  ;;  %4485 = vmatprep.subr.bf16.mxu1 %v4705_v45 }
 0x10a   :  { %v230_v37 = vadd.f32 %v229_v5, %v4961_v60  ;;  %487 = vmatprep.mubr.f32.mxu1 %v301_v61 }
 0x10b   :  { %488 = vmatmul.mubr.f32.gmra.mrb[8].mxu1 %v300_v62  ;;  %v302_v7 = vmax.f32 %v228_v63, 0.0 }
 0x10c   :  { %v303_v6 = vmax.f32 %v230_v37, 0.0  ;;  %v233_v38 = vpop.f32.mrb[12].mxu0  ;;  %4501 = vmatpush1.bf16.msra.mxu1 %v4712_v51 }
 0x10d   :  { %v234_v8 = vadd.f32 %v233_v38, %v4958_v57  ;;  %v235_v11 = vpop.f32.mrb[13].mxu0  ;;  %4486 = vmatprep.subr.bf16.mxu1 %v4716_v52 }
 0x10e   :  { %v236_v44 = vadd.f32 %v235_v11, %v4961_v60  ;;  %493 = vmatprep.mubr.f32.mxu1 %v303_v6 }
 0x10f   :  { %494 = vmatmul.mubr.f32.gmra.mrb[10].mxu1 %v302_v7  ;;  %v304_v13 = vmax.f32 %v234_v8, 0.0 }
 0x110   :  { %v305_v12 = vmax.f32 %v236_v44, 0.0  ;;  %v239_v45 = vpop.f32.mrb[14].mxu0  ;;  %4502 = vmatpush1.bf16.msra.mxu1 %v4723_v58 }
 0x111   :  { %v240_v14 = vadd.f32 %v239_v45, %v4958_v57  ;;  %v241_v15 = vpop.f32.mrb[15].mxu0  ;;  %4487 = vmatprep.subr.bf16.mxu1 %v4727_v59 }
 0x112   :  { %v242_v51 = vadd.f32 %v241_v15, %v4961_v60  ;;  %499 = vmatprep.mubr.f32.mxu1 %v305_v12 }
 0x113   :  { %500 = vmatmul.mubr.f32.gmra.mrb[12].mxu1 %v304_v13  ;;  %v306_v21 = vmax.f32 %v240_v14, 0.0 }
 0x114   :  { %v307_v20 = vmax.f32 %v242_v51, 0.0  ;;  %v245_v52 = vpop.f32.mrb[16].mxu0  ;;  %4503 = vmatpush1.bf16.msra.mxu1 %v4734_v2 }
 0x115   :  { %v246_v24 = vadd.f32 %v245_v52, %v4958_v57  ;;  %v247_v28 = vpop.f32.mrb[17].mxu0  ;;  %4488 = vmatprep.subr.bf16.mxu1 %v4738_v3 }
 0x116   :  { %v248_v58 = vadd.f32 %v247_v28, %v4961_v60  ;;  %505 = vmatprep.mubr.f32.mxu1 %v307_v20 }
 0x117   :  { %506 = vmatmul.mubr.f32.gmra.mrb[14].mxu1 %v306_v21  ;;  %v308_v33 = vmax.f32 %v246_v24, 0.0 }
 0x118   :  { %v309_v29 = vmax.f32 %v248_v58, 0.0  ;;  %v251_v59 = vpop.f32.mrb[18].mxu0  ;;  %4504 = vmatpush1.bf16.msra.mxu1 %v4745_v9 }
 0x119   :  { %v252_v34 = vadd.f32 %v251_v59, %v4958_v57  ;;  %v253_v18 = vpop.f32.mrb[19].mxu0  ;;  %4489 = vmatprep.subr.bf16.mxu1 %v4749_v10 }
 0x11a   :  { %v254_v2 = vadd.f32 %v253_v18, %v4961_v60  ;;  %511 = vmatprep.mubr.f32.mxu1 %v309_v29 }
 0x11b   :  { %512 = vmatmul.mubr.f32.gmra.mrb[16].mxu1 %v308_v33  ;;  %v310_v40 = vmax.f32 %v252_v34, 0.0 }
 0x11c   :  { %v311_v39 = vmax.f32 %v254_v2, 0.0  ;;  %v257_v3 = vpop.f32.mrb[20].mxu0  ;;  %4505 = vmatpush1.bf16.msra.mxu1 %v4756_v16 }
 0x11d   :  { %v258_v41 = vadd.f32 %v257_v3, %v4958_v57  ;;  %v259_v22 = vpop.f32.mrb[21].mxu0  ;;  %4490 = vmatprep.subr.bf16.mxu1 %v4760_v17 }
 0x11e   :  { %v260_v9 = vadd.f32 %v259_v22, %v4961_v60  ;;  %517 = vmatprep.mubr.f32.mxu1 %v311_v39 }
 0x11f   :  { %518 = vmatmul.mubr.f32.gmra.mrb[18].mxu1 %v310_v40  ;;  %v312_v27 = vmax.f32 %v258_v41, 0.0 }
 0x120   :  { %v313_v42 = vmax.f32 %v260_v9, 0.0  ;;  %v263_v10 = vpop.f32.mrb[22].mxu0  ;;  %4506 = vmatpush1.bf16.msra.mxu1 %v4767_v25 }
 0x121   :  { %v264_v43 = vadd.f32 %v263_v10, %v4958_v57  ;;  %v265_v48 = vpop.f32.mrb[23].mxu0  ;;  %4491 = vmatprep.subr.bf16.mxu1 %v4771_v26 }
 0x122   :  { %v266_v16 = vadd.f32 %v265_v48, %v4961_v60  ;;  %523 = vmatprep.mubr.f32.mxu1 %v313_v42 }
 0x123   :  { %524 = vmatmul.mubr.f32.gmra.mrb[20].mxu1 %v312_v27  ;;  %v314_v30 = vmax.f32 %v264_v43, 0.0 }
 0x124   :  { %v315_v1 = vmax.f32 %v266_v16, 0.0  ;;  %v269_v17 = vpop.f32.mrb[24].mxu0  ;;  %4507 = vmatpush1.bf16.msra.mxu1 %v4778_v35 }
 0x125   :  { %v270_v61 = vadd.f32 %v269_v17, %v4958_v57  ;;  %v271_v31 = vpop.f32.mrb[25].mxu0  ;;  %4492 = vmatprep.subr.bf16.mxu1 %v4782_v36 }
 0x126   :  { %v272_v25 = vadd.f32 %v271_v31, %v4961_v60  ;;  %529 = vmatprep.mubr.f32.mxu1 %v315_v1 }
 0x127   :  { %530 = vmatmul.mubr.f32.gmra.mrb[22].mxu1 %v314_v30  ;;  %v316_v63 = vmax.f32 %v270_v61, 0.0 }
 0x128   :  { %v317_v62 = vmax.f32 %v272_v25, 0.0  ;;  %v275_v26 = vpop.f32.mrb[26].mxu0  ;;  %4508 = vmatpush1.bf16.msra.mxu1 %v4789_v46 }
 0x129   :  { %v276_v5 = vadd.f32 %v275_v26, %v4958_v57  ;;  %v277_v37 = vpop.f32.mrb[27].mxu0  ;;  %4493 = vmatprep.subr.bf16.mxu1 %v4793_v47 }
 0x12a   :  { %v278_v35 = vadd.f32 %v277_v37, %v4961_v60  ;;  %535 = vmatprep.mubr.f32.mxu1 %v317_v62 }
 0x12b   :  { %536 = vmatmul.mubr.f32.gmra.mrb[24].mxu1 %v316_v63  ;;  %v318_v38 = vmax.f32 %v276_v5, 0.0 }
 0x12c   :  { %v319_v6 = vmax.f32 %v278_v35, 0.0  ;;  %v281_v36 = vpop.f32.mrb[28].mxu0  ;;  %4509 = vmatpush1.bf16.msra.mxu1 %v4800_v55 }
 0x12d   :  { %v282_v7 = vadd.f32 %v281_v36, %v4958_v57  ;;  %v283_v8 = vpop.f32.mrb[29].mxu0  ;;  %4494 = vmatprep.subr.bf16.mxu1 %v4804_v56 }
 0x12e   :  { %v284_v46 = vadd.f32 %v283_v8, %v4961_v60  ;;  %541 = vmatprep.mubr.f32.mxu1 %v319_v6 }
 0x12f   :  { %542 = vmatmul.mubr.f32.gmra.mrb[26].mxu1 %v318_v38  ;;  %v320_v44 = vmax.f32 %v282_v7, 0.0 }
 0x130   :  { %v321_v11 = vmax.f32 %v284_v46, 0.0  ;;  %v287_v47 = vpop.f32.mrb[30].mxu0  ;;  %4510 = vmatpush1.bf16.msra.mxu1 %v4811_v0 }
 0x131   :  { %v288_v12 = vadd.f32 %v287_v47, %v4958_v57  ;;  %v289_v45 = vpop.f32.mrb[31].mxu0  ;;  %4495 = vmatprep.subr.bf16.mxu1 %v4815_v4 }
 0x132   :  { %v290_v55 = vadd.f32 %v289_v45, %v4961_v60  ;;  %547 = vmatprep.mubr.f32.mxu1 %v321_v11 }
 0x133   :  { %548 = vmatmul.mubr.f32.gmra.mrb[28].mxu1 %v320_v44  ;;  %v322_v14 = vmax.f32 %v288_v12, 0.0 }
 0x134   :  { %v323_v13 = vmax.f32 %v290_v55, 0.0  ;;  %v2338_v56 = vpop.f32.mrb[32].mxu0  ;;  %4511 = vmatpush1.bf16.msra.mxu1 %v4861_v19 }
 0x135   :  { %v2339_v15 = vadd.f32 %v2338_v56, %v4958_v57  ;;  %v2340_v51 = vpop.f32.mrb[33].mxu0  ;;  %4496 = vmatprep.subr.bf16.mxu1 %v4867_v23 }
 0x136   :  { %v2341_v0 = vadd.f32 %v2340_v51, %v4961_v60  ;;  %553 = vmatprep.mubr.f32.mxu1 %v323_v13 }
 0x137   :  { %554 = vmatmul.mubr.f32.gmra.mrb[30].mxu1 %v322_v14  ;;  %v2433_v52 = vmax.f32 %v2339_v15, 0.0 }
 0x138   :  { %v2434_v20 = vmax.f32 %v2341_v0, 0.0  ;;  %v2344_v4 = vpop.f32.mrb[34].mxu0  ;;  %4512 = vmatpush1.bf16.msra.mxu1 %v4873_v32 }
 0x139   :  { %v2345_v21 = vadd.f32 %v2344_v4, %v4958_v57  ;;  %v2346_v24 = vpop.f32.mrb[35].mxu0 }
 0x13a   :  { %v2347_v19 = vadd.f32 %v2346_v24, %v4961_v60  ;;  %2593 = vmatprep.mubr.f32.mxu0 %v2434_v20 }
 0x13b   :  { %2594 = vmatmul.mubr.f32.vlgmr.msra.gmra.mrb[64].mxu0 %v2433_v52  ;;  %v2435_v29 = vmax.f32 %v2345_v21, 0.0 }
 0x13c   :  { %v2436_v28 = vmax.f32 %v2347_v19, 0.0  ;;  %v2350_v58 = vpop.f32.mrb[36].mxu0 }
 0x13d   :  { %v2351_v23 = vadd.f32 %v2350_v58, %v4958_v57  ;;  %v2352_v59 = vpop.f32.mrb[37].mxu0 }
 0x13e   :  { %v2353_v33 = vadd.f32 %v2352_v59, %v4961_v60  ;;  %2599 = vmatprep.mubr.f32.mxu0 %v2436_v28 }
 0x13f   :  { %2600 = vmatmul.mubr.f32.gmra.mrb[66].mxu0 %v2435_v29  ;;  %v2437_v18 = vmax.f32 %v2351_v23, 0.0 }
 0x140   :  { %v2438_v34 = vmax.f32 %v2353_v33, 0.0  ;;  %v2356_v32 = vpop.f32.mrb[38].mxu0 }
 0x141   :  { %v2357_v2 = vadd.f32 %v2356_v32, %v4958_v57  ;;  %v2358_v39 = vpop.f32.mrb[39].mxu0 }
 0x142   :  { %v2359_v3 = vadd.f32 %v2358_v39, %v4961_v60  ;;  %2605 = vmatprep.mubr.f32.mxu0 %v2438_v34 }
 0x143   :  { %2606 = vmatmul.mubr.f32.gmra.mrb[68].mxu0 %v2437_v18  ;;  %v2439_v22 = vmax.f32 %v2357_v2, 0.0 }
 0x144   :  { %v2440_v40 = vmax.f32 %v2359_v3, 0.0  ;;  %v2362_v41 = vpop.f32.mrb[40].mxu0 }
 0x145   :  { %v2363_v9 = vadd.f32 %v2362_v41, %v4958_v57  ;;  %v2364_v42 = vpop.f32.mrb[41].mxu0 }
 0x146   :  { %v2365_v10 = vadd.f32 %v2364_v42, %v4961_v60  ;;  %2611 = vmatprep.mubr.f32.mxu0 %v2440_v40 }
 0x147   :  { %2612 = vmatmul.mubr.f32.gmra.mrb[70].mxu0 %v2439_v22  ;;  %v2441_v48 = vmax.f32 %v2363_v9, 0.0 }
 0x148   :  { %v2442_v27 = vmax.f32 %v2365_v10, 0.0  ;;  %v2368_v43 = vpop.f32.mrb[42].mxu0 }
 0x149   :  { %v2369_v16 = vadd.f32 %v2368_v43, %v4958_v57  ;;  %v2370_v1 = vpop.f32.mrb[43].mxu0 }
 0x14a   :  { %v2371_v17 = vadd.f32 %v2370_v1, %v4961_v60  ;;  %2617 = vmatprep.mubr.f32.mxu0 %v2442_v27 }
 0x14b   :  { %2618 = vmatmul.mubr.f32.gmra.mrb[72].mxu0 %v2441_v48  ;;  %v2443_v31 = vmax.f32 %v2369_v16, 0.0 }
 0x14c   :  { %v2444_v30 = vmax.f32 %v2371_v17, 0.0  ;;  %v2374_v61 = vpop.f32.mrb[44].mxu0 }
 0x14d   :  { %v2375_v25 = vadd.f32 %v2374_v61, %v4958_v57  ;;  %v2376_v62 = vpop.f32.mrb[45].mxu0 }
 0x14e   :  { %v2377_v26 = vadd.f32 %v2376_v62, %v4961_v60  ;;  %2623 = vmatprep.mubr.f32.mxu0 %v2444_v30  ;;  %v44_v62 = vld [vmem:[%s6135_s4] sm:$0x3]  ;;  %s4576_s4 = smov [#allocation6]  }
 0x14f   :  { %2624 = vmatmul.mubr.f32.gmra.mrb[74].mxu0 %v2443_v31  ;;  %v2445_v37 = vmax.f32 %v2375_v25, 0.0 }
 0x150   :  { %v2446_v63 = vmax.f32 %v2377_v26, 0.0  ;;  %v2380_v5 = vpop.f32.mrb[46].mxu0  ;;  %v5062_v26 = vrot.slane %v44_v62, %v4949_v53 }
 0x151   :  { %v2381_v35 = vadd.f32 %v2380_v5, %v4958_v57  ;;  %v2382_v6 = vpop.f32.mrb[47].mxu0 }
 0x152   :  { %v2383_v36 = vadd.f32 %v2382_v6, %v4961_v60  ;;  %2629 = vmatprep.mubr.f32.mxu0 %v2446_v63  ;;  %v5068_v63 = vrot.slane %v44_v62, %v4955_v54 }
 0x153   :  { %2630 = vmatmul.mubr.f32.gmra.mrb[76].mxu0 %v2445_v37  ;;  %v2447_v8 = vmax.f32 %v2381_v35, 0.0 }
 0x154   :  { %v2448_v38 = vmax.f32 %v2383_v36, 0.0  ;;  %v2386_v7 = vpop.f32.mrb[48].mxu0 }
 0x155   :  { %v2387_v46 = vadd.f32 %v2386_v7, %v4958_v57  ;;  %v2388_v11 = vpop.f32.mrb[49].mxu0 }
 0x156   :  { %v2389_v47 = vadd.f32 %v2388_v11, %v4961_v60  ;;  %2635 = vmatprep.mubr.f32.mxu1 %v2448_v38 }
 0x157   :  { %2636 = vmatmul.mubr.f32.vlgmr.msra.gmra.mrb[32].mxu1 %v2447_v8  ;;  %v2449_v45 = vmax.f32 %v2387_v46, 0.0 }
 0x158   :  { %v2450_v44 = vmax.f32 %v2389_v47, 0.0  ;;  %v2392_v12 = vpop.f32.mrb[50].mxu0 }
 0x159   :  { %v2393_v55 = vadd.f32 %v2392_v12, %v4958_v57  ;;  %v2394_v13 = vpop.f32.mrb[51].mxu0 }
 0x15a   :  { %v2395_v56 = vadd.f32 %v2394_v13, %v4961_v60  ;;  %2641 = vmatprep.mubr.f32.mxu1 %v2450_v44 }
 0x15b   :  { %2642 = vmatmul.mubr.f32.gmra.mrb[34].mxu1 %v2449_v45  ;;  %v2451_v51 = vmax.f32 %v2393_v55, 0.0 }
 0x15c   :  { %v2452_v14 = vmax.f32 %v2395_v56, 0.0  ;;  %v2398_v15 = vpop.f32.mrb[52].mxu0 }
 0x15d   :  { %v2399_v0 = vadd.f32 %v2398_v15, %v4958_v57  ;;  %v2400_v20 = vpop.f32.mrb[53].mxu0 }
 0x15e   :  { %v2401_v4 = vadd.f32 %v2400_v20, %v4961_v60  ;;  %2647 = vmatprep.mubr.f32.mxu1 %v2452_v14 }
 0x15f   :  { %2648 = vmatmul.mubr.f32.gmra.mrb[36].mxu1 %v2451_v51  ;;  %v2453_v24 = vmax.f32 %v2399_v0, 0.0 }
 0x160   :  { %v2454_v52 = vmax.f32 %v2401_v4, 0.0  ;;  %v2404_v21 = vpop.f32.mrb[54].mxu0 }
 0x161   :  { %v2405_v19 = vadd.f32 %v2404_v21, %v4958_v57  ;;  %v2406_v28 = vpop.f32.mrb[55].mxu0 }
 0x162   :  { %v2407_v58 = vadd.f32 %v2406_v28, %v4961_v60  ;;  %2653 = vmatprep.mubr.f32.mxu1 %v2454_v52 }
 0x163   :  { %2654 = vmatmul.mubr.f32.gmra.mrb[38].mxu1 %v2453_v24  ;;  %v2455_v59 = vmax.f32 %v2405_v19, 0.0 }
 0x164   :  { %v2456_v29 = vmax.f32 %v2407_v58, 0.0  ;;  %v2410_v23 = vpop.f32.mrb[56].mxu0 }
 0x165   :  { %v2411_v33 = vadd.f32 %v2410_v23, %v4958_v57  ;;  %v2412_v34 = vpop.f32.mrb[57].mxu0 }
 0x166   :  { %v2413_v32 = vadd.f32 %v2412_v34, %v4961_v60  ;;  %2659 = vmatprep.mubr.f32.mxu1 %v2456_v29 }
 0x167   :  { %2660 = vmatmul.mubr.f32.gmra.mrb[40].mxu1 %v2455_v59  ;;  %v2457_v39 = vmax.f32 %v2411_v33, 0.0 }
 0x168   :  { %v2458_v18 = vmax.f32 %v2413_v32, 0.0  ;;  %v2416_v2 = vpop.f32.mrb[58].mxu0 }
 0x169   :  { %v2417_v3 = vadd.f32 %v2416_v2, %v4958_v57  ;;  %v2418_v40 = vpop.f32.mrb[59].mxu0 }
 0x16a   :  { %v2419_v41 = vadd.f32 %v2418_v40, %v4961_v60  ;;  %2665 = vmatprep.mubr.f32.mxu1 %v2458_v18 }
 0x16b   :  { %2666 = vmatmul.mubr.f32.gmra.mrb[42].mxu1 %v2457_v39  ;;  %v2459_v42 = vmax.f32 %v2417_v3, 0.0 }
 0x16c   :  { %v2460_v22 = vmax.f32 %v2419_v41, 0.0  ;;  %v2422_v9 = vpop.f32.mrb[60].mxu0 }
 0x16d   :  { %v2423_v10 = vadd.f32 %v2422_v9, %v4958_v57  ;;  %v2424_v27 = vpop.f32.mrb[61].mxu0 }
 0x16e   :  { %v2425_v43 = vadd.f32 %v2424_v27, %v4961_v60  ;;  %2671 = vmatprep.mubr.f32.mxu1 %v2460_v22 }
 0x16f   :  { %2672 = vmatmul.mubr.f32.gmra.mrb[44].mxu1 %v2459_v42  ;;  %v2461_v1 = vmax.f32 %v2423_v10, 0.0 }
 0x170   :  { %v2462_v48 = vmax.f32 %v2425_v43, 0.0  ;;  %v2428_v16 = vpop.f32.mrb[62].mxu0 }
 0x171   :  { %v2429_v17 = vadd.f32 %v2428_v16, %v4958_v57  ;;  %v2430_v30 = vpop.f32.mrb[63].mxu0  ;;  %v45_v57 = vld [vmem:[%s6136_s5] sm:$0x3]  ;;  %s4280_s5 = sshll.u32 %s4576_s4, 4  ;;  %s4281_s5 = int_to_ptr.vmem [resolvable:$true] %s4280_s5 }
 0x172   :  { %v2431_v61 = vadd.f32 %v2430_v30, %v4961_v60  ;;  %2677 = vmatprep.mubr.f32.mxu1 %v2462_v48  ;;  %v5072_v37 = vrot.slane %v45_v57, %v4949_v53  ;;  %v5076_v36 = vrot.slane %v45_v57, %v4955_v54  ;;  %s4544_s22 = scalar_lea.vmem %s4281_s5, 32  ;;  %p4549_p9 = scmp.lt.s32.totalorder %s4281_s5, %s4281_s5 }
 0x173   :  { %2678 = vmatmul.mubr.f32.gmra.mrb[46].mxu1 %v2461_v1  ;;  %v2463_v25 = vmax.f32 %v2429_v17, 0.0  ;;  %p4545_p8 = scmp.ne.s32.totalorder %s4281_s5, %s4544_s22  ;;  %p4550_p10 = scmp.lt.s32.totalorder %s4544_s22, %s4544_s22 }
 0x174   :  { %v2464_v31 = vmax.f32 %v2431_v61, 0.0 }
 0x175   :  { %p4551_p11 = por %p4550_p10, %p4549_p9 }
 0x176   :  { %2683 = vmatprep.mubr.f32.mxu1 %v2464_v31 }
 0x177   :  { %2684 = vmatmul.mubr.f32.gmra.mrb[48].mxu1 %v2463_v25  ;;  %p4552_p12 = pnand %p4551_p11, %p4545_p8 }
 0x1ce   :  { %v465_v60 = vpop.f32.mrb[0].mxu1 }
 0x1cf   :  { %v466_v5 = vadd.f32 %v465_v60, %v5062_v26  ;;  %v467_v35 = vpop.f32.mrb[1].mxu1 }
 0x1d0   :  { %v468_v6 = vadd.f32 %v467_v35, %v5068_v63 }
 0x1d1   :  { %v560_v38 = vmax.f32 %v466_v5, 0.0 }
 0x1d2   :  { %v561_v7 = vmax.f32 %v468_v6, 0.0  ;;  %v471_v8 = vpop.f32.mrb[2].mxu1 }
 0x1d3   :  { %v603_v46 = vmul.f32 %v5072_v37, %v560_v38  ;;  %v472_v11 = vadd.f32 %v471_v8, %v5062_v26  ;;  %v473_v47 = vpop.f32.mrb[3].mxu1 }
 0x1d4   :  { %v604_v44 = vmul.f32 %v5076_v36, %v561_v7  ;;  %v474_v12 = vadd.f32 %v473_v47, %v5068_v63 }
 0x1d5   :  { %v562_v45 = vmax.f32 %v472_v11, 0.0 }
 0x1d6   :  { %v563_v55 = vmax.f32 %v474_v12, 0.0  ;;  %v477_v13 = vpop.f32.mrb[4].mxu1  ;;  %v635_v56 = vadd.f32 %v604_v44, %v603_v46 }
 0x1d7   :  { %v605_v14 = vmul.f32 %v5072_v37, %v562_v45  ;;  %v478_v15 = vadd.f32 %v477_v13, %v5062_v26  ;;  %v479_v51 = vpop.f32.mrb[5].mxu1 }
 0x1d8   :  { %v606_v0 = vmul.f32 %v5076_v36, %v563_v55  ;;  %v480_v20 = vadd.f32 %v479_v51, %v5068_v63  ;;  %636 = vadd.xlane.f32.xlu0 %v635_v56 }
 0x1d9   :  { %v564_v4 = vmax.f32 %v478_v15, 0.0 }
 0x1da   :  { %v565_v52 = vmax.f32 %v480_v20, 0.0  ;;  %v483_v21 = vpop.f32.mrb[6].mxu1  ;;  %v638_v24 = vadd.f32 %v606_v0, %v605_v14 }
 0x1db   :  { %v484_v19 = vadd.f32 %v483_v21, %v5062_v26  ;;  %v485_v28 = vpop.f32.mrb[7].mxu1  ;;  %v607_v58 = vmul.f32 %v5072_v37, %v564_v4 }
 0x1dc   :  { %v486_v29 = vadd.f32 %v485_v28, %v5068_v63  ;;  %639 = vadd.xlane.f32.xlu0 %v638_v24  ;;  %v608_v23 = vmul.f32 %v5076_v36, %v565_v52 }
 0x1dd   :  { %v566_v59 = vmax.f32 %v484_v19, 0.0 }
 0x1de   :  { %v567_v33 = vmax.f32 %v486_v29, 0.0  ;;  %v489_v34 = vpop.f32.mrb[8].mxu1  ;;  %v641_v32 = vadd.f32 %v608_v23, %v607_v58 }
 0x1df   :  { %v609_v18 = vmul.f32 %v5072_v37, %v566_v59  ;;  %v490_v2 = vadd.f32 %v489_v34, %v5062_v26  ;;  %v491_v39 = vpop.f32.mrb[9].mxu1 }
 0x1e0   :  { %v610_v3 = vmul.f32 %v5076_v36, %v567_v33  ;;  %v492_v40 = vadd.f32 %v491_v39, %v5068_v63  ;;  %642 = vadd.xlane.f32.xlu1 %v641_v32 }
 0x1e1   :  { %v568_v41 = vmax.f32 %v490_v2, 0.0 }
 0x1e2   :  { %v569_v22 = vmax.f32 %v492_v40, 0.0  ;;  %v495_v9 = vpop.f32.mrb[10].mxu1  ;;  %v644_v42 = vadd.f32 %v610_v3, %v609_v18 }
 0x1e3   :  { %v611_v10 = vmul.f32 %v5072_v37, %v568_v41  ;;  %v496_v27 = vadd.f32 %v495_v9, %v5062_v26  ;;  %v497_v43 = vpop.f32.mrb[11].mxu1 }
 0x1e4   :  { %v612_v48 = vmul.f32 %v5076_v36, %v569_v22  ;;  %v498_v16 = vadd.f32 %v497_v43, %v5068_v63  ;;  %645 = vadd.xlane.f32.xlu1 %v644_v42 }
 0x1e5   :  { %v570_v1 = vmax.f32 %v496_v27, 0.0 }
 0x1e6   :  { %v571_v17 = vmax.f32 %v498_v16, 0.0  ;;  %v501_v30 = vpop.f32.mrb[12].mxu1  ;;  %v647_v61 = vadd.f32 %v612_v48, %v611_v10 }
 0x1e7   :  { %v613_v31 = vmul.f32 %v5072_v37, %v570_v1  ;;  %v502_v25 = vadd.f32 %v501_v30, %v5062_v26  ;;  %v503_v62 = vpop.f32.mrb[13].mxu1 }
 0x1e8   :  { %v614_v57 = vmul.f32 %v5076_v36, %v571_v17  ;;  %v504_v60 = vadd.f32 %v503_v62, %v5068_v63  ;;  %648 = vadd.xlane.f32.xlu0 %v647_v61 }
 0x1e9   :  { %v572_v5 = vmax.f32 %v502_v25, 0.0 }
 0x1ea   :  { %v573_v35 = vmax.f32 %v504_v60, 0.0  ;;  %v507_v6 = vpop.f32.mrb[14].mxu1  ;;  %v650_v38 = vadd.f32 %v614_v57, %v613_v31 }
 0x1eb   :  { %v615_v7 = vmul.f32 %v5072_v37, %v572_v5  ;;  %v508_v8 = vadd.f32 %v507_v6, %v5062_v26  ;;  %v509_v46 = vpop.f32.mrb[15].mxu1 }
 0x1ec   :  { %v616_v11 = vmul.f32 %v5076_v36, %v573_v35  ;;  %v510_v47 = vadd.f32 %v509_v46, %v5068_v63  ;;  %651 = vadd.xlane.f32.xlu1 %v650_v38 }
 0x1ed   :  { %v574_v44 = vmax.f32 %v508_v8, 0.0 }
 0x1ee   :  { %v575_v12 = vmax.f32 %v510_v47, 0.0  ;;  %v513_v45 = vpop.f32.mrb[16].mxu1  ;;  %v653_v55 = vadd.f32 %v616_v11, %v615_v7 }
 0x1ef   :  { %v617_v13 = vmul.f32 %v5072_v37, %v574_v44  ;;  %v514_v56 = vadd.f32 %v513_v45, %v5062_v26  ;;  %v515_v14 = vpop.f32.mrb[17].mxu1 }
 0x1f0   :  { %v618_v15 = vmul.f32 %v5076_v36, %v575_v12  ;;  %v516_v51 = vadd.f32 %v515_v14, %v5068_v63  ;;  %654 = vadd.xlane.f32.xlu0 %v653_v55 }
 0x1f1   :  { %v576_v0 = vmax.f32 %v514_v56, 0.0 }
 0x1f2   :  { %v577_v20 = vmax.f32 %v516_v51, 0.0  ;;  %v519_v4 = vpop.f32.mrb[18].mxu1  ;;  %v656_v52 = vadd.f32 %v618_v15, %v617_v13 }
 0x1f3   :  { %v619_v21 = vmul.f32 %v5072_v37, %v576_v0  ;;  %v520_v24 = vadd.f32 %v519_v4, %v5062_v26  ;;  %v521_v19 = vpop.f32.mrb[19].mxu1 }
 0x1f4   :  { %v620_v28 = vmul.f32 %v5076_v36, %v577_v20  ;;  %v522_v58 = vadd.f32 %v521_v19, %v5068_v63  ;;  %657 = vadd.xlane.f32.xlu1 %v656_v52 }
 0x1f5   :  { %v578_v29 = vmax.f32 %v520_v24, 0.0 }
 0x1f6   :  { %v579_v23 = vmax.f32 %v522_v58, 0.0  ;;  %v525_v59 = vpop.f32.mrb[20].mxu1  ;;  %v659_v33 = vadd.f32 %v620_v28, %v619_v21 }
 0x1f7   :  { %v621_v34 = vmul.f32 %v5072_v37, %v578_v29  ;;  %v526_v32 = vadd.f32 %v525_v59, %v5062_v26  ;;  %v527_v18 = vpop.f32.mrb[21].mxu1 }
 0x1f8   :  { %v622_v2 = vmul.f32 %v5076_v36, %v579_v23  ;;  %v528_v39 = vadd.f32 %v527_v18, %v5068_v63  ;;  %660 = vadd.xlane.f32.xlu0 %v659_v33 }
 0x1f9   :  { %v580_v3 = vmax.f32 %v526_v32, 0.0 }
 0x1fa   :  { %v581_v40 = vmax.f32 %v528_v39, 0.0  ;;  %v531_v41 = vpop.f32.mrb[22].mxu1  ;;  %v662_v22 = vadd.f32 %v622_v2, %v621_v34 }
 0x1fb   :  { %v623_v9 = vmul.f32 %v5072_v37, %v580_v3  ;;  %v532_v42 = vadd.f32 %v531_v41, %v5062_v26  ;;  %v533_v10 = vpop.f32.mrb[23].mxu1 }
 0x1fc   :  { %v624_v27 = vmul.f32 %v5076_v36, %v581_v40  ;;  %v534_v43 = vadd.f32 %v533_v10, %v5068_v63  ;;  %663 = vadd.xlane.f32.xlu1 %v662_v22 }
 0x1fd   :  { %v582_v48 = vmax.f32 %v532_v42, 0.0 }
 0x1fe   :  { %v583_v16 = vmax.f32 %v534_v43, 0.0  ;;  %v537_v1 = vpop.f32.mrb[24].mxu1  ;;  %v665_v17 = vadd.f32 %v624_v27, %v623_v9 }
 0x1ff   :  { %v625_v30 = vmul.f32 %v5072_v37, %v582_v48  ;;  %v538_v61 = vadd.f32 %v537_v1, %v5062_v26  ;;  %v539_v31 = vpop.f32.mrb[25].mxu1 }
 0x200   :  { %v626_v25 = vmul.f32 %v5076_v36, %v583_v16  ;;  %v540_v62 = vadd.f32 %v539_v31, %v5068_v63  ;;  %666 = vadd.xlane.f32.xlu0 %v665_v17 }
 0x201   :  { %v584_v57 = vmax.f32 %v538_v61, 0.0 }
 0x202   :  { %v585_v60 = vmax.f32 %v540_v62, 0.0  ;;  %v543_v5 = vpop.f32.mrb[26].mxu1  ;;  %v668_v35 = vadd.f32 %v626_v25, %v625_v30 }
 0x203   :  { %v627_v6 = vmul.f32 %v5072_v37, %v584_v57  ;;  %v544_v38 = vadd.f32 %v543_v5, %v5062_v26  ;;  %v545_v7 = vpop.f32.mrb[27].mxu1 }
 0x204   :  { %v628_v8 = vmul.f32 %v5076_v36, %v585_v60  ;;  %v546_v46 = vadd.f32 %v545_v7, %v5068_v63  ;;  %669 = vadd.xlane.f32.xlu1 %v668_v35 }
 0x205   :  { %v586_v11 = vmax.f32 %v544_v38, 0.0 }
 0x206   :  { %v587_v47 = vmax.f32 %v546_v46, 0.0  ;;  %v549_v44 = vpop.f32.mrb[28].mxu1  ;;  %v671_v12 = vadd.f32 %v628_v8, %v627_v6 }
 0x207   :  { %v629_v45 = vmul.f32 %v5072_v37, %v586_v11  ;;  %v550_v55 = vadd.f32 %v549_v44, %v5062_v26  ;;  %v551_v13 = vpop.f32.mrb[29].mxu1 }
 0x208   :  { %v630_v56 = vmul.f32 %v5076_v36, %v587_v47  ;;  %v552_v14 = vadd.f32 %v551_v13, %v5068_v63  ;;  %672 = vadd.xlane.f32.xlu0 %v671_v12 }
 0x209   :  { %v588_v15 = vmax.f32 %v550_v55, 0.0 }
 0x20a   :  { %v589_v51 = vmax.f32 %v552_v14, 0.0  ;;  %v555_v0 = vpop.f32.mrb[30].mxu1  ;;  %v674_v20 = vadd.f32 %v630_v56, %v629_v45 }
 0x20b   :  { %v631_v4 = vmul.f32 %v5072_v37, %v588_v15  ;;  %v556_v52 = vadd.f32 %v555_v0, %v5062_v26  ;;  %v557_v21 = vpop.f32.mrb[31].mxu1 }
 0x20c   :  { %v632_v24 = vmul.f32 %v5076_v36, %v589_v51  ;;  %v558_v19 = vadd.f32 %v557_v21, %v5068_v63  ;;  %675 = vadd.xlane.f32.xlu1 %v674_v20 }
 0x20d   :  { %v590_v28 = vmax.f32 %v556_v52, 0.0 }
 0x20e   :  { %v591_v58 = vmax.f32 %v558_v19, 0.0  ;;  %v2595_v29 = vpop.f32.mrb[64].mxu0  ;;  %v677_v23 = vadd.f32 %v632_v24, %v631_v4 }
 0x20f   :  { %v633_v59 = vmul.f32 %v5072_v37, %v590_v28  ;;  %v2596_v33 = vadd.f32 %v2595_v29, %v5062_v26  ;;  %v2597_v34 = vpop.f32.mrb[65].mxu0 }
 0x210   :  { %v634_v32 = vmul.f32 %v5076_v36, %v591_v58  ;;  %v2598_v18 = vadd.f32 %v2597_v34, %v5068_v63  ;;  %678 = vadd.xlane.f32.xlu0 %v677_v23 }
 0x211   :  { %v2690_v2 = vmax.f32 %v2596_v33, 0.0 }
 0x212   :  { %v2691_v39 = vmax.f32 %v2598_v18, 0.0  ;;  %v2601_v3 = vpop.f32.mrb[66].mxu0  ;;  %v680_v40 = vadd.f32 %v634_v32, %v633_v59 }
 0x213   :  { %v2722_v41 = vmul.f32 %v2690_v2, %v5072_v37  ;;  %v2602_v22 = vadd.f32 %v2601_v3, %v5062_v26  ;;  %v2603_v9 = vpop.f32.mrb[67].mxu0 }
 0x214   :  { %v2723_v42 = vmul.f32 %v2691_v39, %v5076_v36  ;;  %v2604_v10 = vadd.f32 %v2603_v9, %v5068_v63  ;;  %681 = vadd.xlane.f32.xlu1 %v680_v40 }
 0x215   :  { %v2692_v27 = vmax.f32 %v2602_v22, 0.0 }
 0x216   :  { %v2693_v43 = vmax.f32 %v2604_v10, 0.0  ;;  %v2607_v48 = vpop.f32.mrb[68].mxu0  ;;  %v2754_v16 = vadd.f32 %v2723_v42, %v2722_v41 }
 0x217   :  { %v2724_v1 = vmul.f32 %v2692_v27, %v5072_v37  ;;  %v2608_v17 = vadd.f32 %v2607_v48, %v5062_v26  ;;  %v2609_v30 = vpop.f32.mrb[69].mxu0 }
 0x218   :  { %v2725_v61 = vmul.f32 %v2693_v43, %v5076_v36  ;;  %v2610_v31 = vadd.f32 %v2609_v30, %v5068_v63  ;;  %2755 = vadd.xlane.f32.xlu1 %v2754_v16 }
 0x219   :  { %v2694_v25 = vmax.f32 %v2608_v17, 0.0 }
 0x21a   :  { %v2695_v62 = vmax.f32 %v2610_v31, 0.0  ;;  %v2613_v57 = vpop.f32.mrb[70].mxu0  ;;  %v2757_v60 = vadd.f32 %v2725_v61, %v2724_v1 }
 0x21b   :  { %v2726_v5 = vmul.f32 %v2694_v25, %v5072_v37  ;;  %v2614_v35 = vadd.f32 %v2613_v57, %v5062_v26  ;;  %v2615_v6 = vpop.f32.mrb[71].mxu0 }
 0x21c   :  { %v2727_v38 = vmul.f32 %v2695_v62, %v5076_v36  ;;  %v2616_v7 = vadd.f32 %v2615_v6, %v5068_v63  ;;  %2758 = vadd.xlane.f32.xlu0 %v2757_v60 }
 0x21d   :  { %v2696_v8 = vmax.f32 %v2614_v35, 0.0 }
 0x21e   :  { %v2697_v46 = vmax.f32 %v2616_v7, 0.0  ;;  %v2619_v11 = vpop.f32.mrb[72].mxu0  ;;  %v2760_v47 = vadd.f32 %v2727_v38, %v2726_v5 }
 0x21f   :  { %v2728_v44 = vmul.f32 %v2696_v8, %v5072_v37  ;;  %v2620_v12 = vadd.f32 %v2619_v11, %v5062_v26  ;;  %v2621_v45 = vpop.f32.mrb[73].mxu0 }
 0x220   :  { %v2729_v55 = vmul.f32 %v2697_v46, %v5076_v36  ;;  %v2622_v13 = vadd.f32 %v2621_v45, %v5068_v63  ;;  %2761 = vadd.xlane.f32.xlu1 %v2760_v47 }
 0x221   :  { %v2698_v56 = vmax.f32 %v2620_v12, 0.0 }
 0x222   :  { %v2699_v14 = vmax.f32 %v2622_v13, 0.0  ;;  %v2625_v15 = vpop.f32.mrb[74].mxu0  ;;  %v2763_v51 = vadd.f32 %v2729_v55, %v2728_v44 }
 0x223   :  { %v2730_v0 = vmul.f32 %v2698_v56, %v5072_v37  ;;  %v2626_v20 = vadd.f32 %v2625_v15, %v5062_v26  ;;  %v2627_v4 = vpop.f32.mrb[75].mxu0 }
 0x224   :  { %v2731_v52 = vmul.f32 %v2699_v14, %v5076_v36  ;;  %v2628_v21 = vadd.f32 %v2627_v4, %v5068_v63  ;;  %2764 = vadd.xlane.f32.xlu1 %v2763_v51 }
 0x225   :  { %v2700_v24 = vmax.f32 %v2626_v20, 0.0 }
 0x226   :  { %v2701_v19 = vmax.f32 %v2628_v21, 0.0  ;;  %v2631_v28 = vpop.f32.mrb[76].mxu0  ;;  %v2766_v58 = vadd.f32 %v2731_v52, %v2730_v0 }
 0x227   :  { %v2732_v29 = vmul.f32 %v2700_v24, %v5072_v37  ;;  %v2632_v23 = vadd.f32 %v2631_v28, %v5062_v26  ;;  %v2633_v59 = vpop.f32.mrb[77].mxu0 }
 0x228   :  { %v2733_v33 = vmul.f32 %v2701_v19, %v5076_v36  ;;  %v2634_v34 = vadd.f32 %v2633_v59, %v5068_v63  ;;  %2767 = vadd.xlane.f32.xlu0 %v2766_v58 }
 0x229   :  { %v2702_v32 = vmax.f32 %v2632_v23, 0.0 }
 0x22a   :  { %v2703_v18 = vmax.f32 %v2634_v34, 0.0  ;;  %v2637_v2 = vpop.f32.mrb[32].mxu1  ;;  %v2769_v39 = vadd.f32 %v2733_v33, %v2732_v29 }
 0x22b   :  { %v2734_v3 = vmul.f32 %v2702_v32, %v5072_v37  ;;  %v2638_v40 = vadd.f32 %v2637_v2, %v5062_v26  ;;  %v2639_v41 = vpop.f32.mrb[33].mxu1 }
 0x22c   :  { %v2735_v22 = vmul.f32 %v2703_v18, %v5076_v36  ;;  %v2640_v9 = vadd.f32 %v2639_v41, %v5068_v63  ;;  %2770 = vadd.xlane.f32.xlu1 %v2769_v39 }
 0x22d   :  { %v2704_v42 = vmax.f32 %v2638_v40, 0.0 }
 0x22e   :  { %v2705_v10 = vmax.f32 %v2640_v9, 0.0  ;;  %v2643_v27 = vpop.f32.mrb[34].mxu1  ;;  %v2772_v43 = vadd.f32 %v2735_v22, %v2734_v3 }
 0x22f   :  { %v2736_v48 = vmul.f32 %v2704_v42, %v5072_v37  ;;  %v2644_v16 = vadd.f32 %v2643_v27, %v5062_v26  ;;  %v2645_v1 = vpop.f32.mrb[35].mxu1 }
 0x230   :  { %v2737_v17 = vmul.f32 %v2705_v10, %v5076_v36  ;;  %v2646_v30 = vadd.f32 %v2645_v1, %v5068_v63  ;;  %2773 = vadd.xlane.f32.xlu0 %v2772_v43 }
 0x231   :  { %v2706_v61 = vmax.f32 %v2644_v16, 0.0 }
 0x232   :  { %v2707_v31 = vmax.f32 %v2646_v30, 0.0  ;;  %v2649_v25 = vpop.f32.mrb[36].mxu1  ;;  %v2775_v62 = vadd.f32 %v2737_v17, %v2736_v48 }
 0x233   :  { %v2738_v57 = vmul.f32 %v2706_v61, %v5072_v37  ;;  %v2650_v60 = vadd.f32 %v2649_v25, %v5062_v26  ;;  %v2651_v5 = vpop.f32.mrb[37].mxu1 }
 0x234   :  { %v2739_v35 = vmul.f32 %v2707_v31, %v5076_v36  ;;  %v2652_v6 = vadd.f32 %v2651_v5, %v5068_v63  ;;  %2776 = vadd.xlane.f32.xlu1 %v2775_v62 }
 0x235   :  { %v2708_v38 = vmax.f32 %v2650_v60, 0.0 }
 0x236   :  { %v2709_v7 = vmax.f32 %v2652_v6, 0.0  ;;  %v2655_v8 = vpop.f32.mrb[38].mxu1  ;;  %v2778_v46 = vadd.f32 %v2739_v35, %v2738_v57 }
 0x237   :  { %v2740_v11 = vmul.f32 %v2708_v38, %v5072_v37  ;;  %v2656_v47 = vadd.f32 %v2655_v8, %v5062_v26  ;;  %v2657_v44 = vpop.f32.mrb[39].mxu1 }
 0x238   :  { %v2741_v12 = vmul.f32 %v2709_v7, %v5076_v36  ;;  %v2658_v45 = vadd.f32 %v2657_v44, %v5068_v63  ;;  %2779 = vadd.xlane.f32.xlu0 %v2778_v46 }
 0x239   :  { %v2710_v55 = vmax.f32 %v2656_v47, 0.0  ;;  %v4575_v47 = vmov 1966171168  }
 0x23a   :  { %v2711_v13 = vmax.f32 %v2658_v45, 0.0  ;;  %v2661_v56 = vpop.f32.mrb[40].mxu1  ;;  %v2781_v14 = vadd.f32 %v2741_v12, %v2740_v11  ;;  %v686_v11 = vpop.permute.xlu0 %685  ;;  %v1241_v44 = vunpack.c.l.s4 %v4575_v47  ;;  %v5211_v45 = vsub.s32 3, %v4946_v50 }
 0x23b   :  { %v2742_v15 = vmul.f32 %v2710_v55, %v5072_v37  ;;  %v2662_v51 = vadd.f32 %v2661_v56, %v5062_v26  ;;  %v2663_v0 = vpop.f32.mrb[41].mxu1  ;;  %v5223_v56 = vsub.s32 7, %v4946_v50 }
 0x23c   :  { %v2743_v20 = vmul.f32 %v2711_v13, %v5076_v36  ;;  %v2664_v4 = vadd.f32 %v2663_v0, %v5068_v63  ;;  %2782 = vadd.xlane.f32.xlu1 %v2781_v14  ;;  %v1242_v12 = vunpack.c.0.s8 %v1241_v44  ;;  %v5220_v13 = vsub.s32 6, %v4946_v50 }
 0x23d   :  { %v2712_v52 = vmax.f32 %v2662_v51, 0.0 }
 0x23e   :  { %v2713_v21 = vmax.f32 %v2664_v4, 0.0  ;;  %v2667_v24 = vpop.f32.mrb[42].mxu1  ;;  %v2784_v19 = vadd.f32 %v2743_v20, %v2742_v15  ;;  %v5227_v15 = vsub.s32 %v1242_v12, %v4946_v50 }
 0x23f   :  { %v2744_v28 = vmul.f32 %v2712_v52, %v5072_v37  ;;  %v2668_v58 = vadd.f32 %v2667_v24, %v5062_v26  ;;  %v2669_v29 = vpop.f32.mrb[43].mxu1 }
 0x240   :  { %v2745_v23 = vmul.f32 %v2713_v21, %v5076_v36  ;;  %v2670_v59 = vadd.f32 %v2669_v29, %v5068_v63  ;;  %2785 = vadd.xlane.f32.xlu0 %v2784_v19 }
 0x241   :  { %v2714_v33 = vmax.f32 %v2668_v58, 0.0 }
 0x242   :  { %v2715_v34 = vmax.f32 %v2670_v59, 0.0  ;;  %v2673_v32 = vpop.f32.mrb[44].mxu1  ;;  %v2787_v18 = vadd.f32 %v2745_v23, %v2744_v28 }
 0x243   :  { %v2746_v2 = vmul.f32 %v2714_v33, %v5072_v37  ;;  %v2674_v39 = vadd.f32 %v2673_v32, %v5062_v26  ;;  %v2675_v3 = vpop.f32.mrb[45].mxu1 }
 0x244   :  { %v2747_v40 = vmul.f32 %v2715_v34, %v5076_v36  ;;  %v2676_v41 = vadd.f32 %v2675_v3, %v5068_v63  ;;  %2788 = vadd.xlane.f32.xlu1 %v2787_v18 }
 0x245   :  { %v2716_v22 = vmax.f32 %v2674_v39, 0.0 }
 0x246   :  { %v2717_v9 = vmax.f32 %v2676_v41, 0.0  ;;  %v2679_v42 = vpop.f32.mrb[46].mxu1  ;;  %v2790_v10 = vadd.f32 %v2747_v40, %v2746_v2 }
 0x247   :  { %v2748_v27 = vmul.f32 %v2716_v22, %v5072_v37  ;;  %v2680_v43 = vadd.f32 %v2679_v42, %v5062_v26  ;;  %v2681_v48 = vpop.f32.mrb[47].mxu1 }
 0x248   :  { %v2749_v16 = vmul.f32 %v2717_v9, %v5076_v36  ;;  %v2682_v1 = vadd.f32 %v2681_v48, %v5068_v63  ;;  %2791 = vadd.xlane.f32.xlu0 %v2790_v10 }
 0x249   :  { %v2718_v17 = vmax.f32 %v2680_v43, 0.0 }
 0x24a   :  { %v2719_v30 = vmax.f32 %v2682_v1, 0.0  ;;  %v2685_v61 = vpop.f32.mrb[48].mxu1  ;;  %v2793_v31 = vadd.f32 %v2749_v16, %v2748_v27 }
 0x24b   :  { %v2750_v25 = vmul.f32 %v2718_v17, %v5072_v37  ;;  %v2686_v62 = vadd.f32 %v2685_v61, %v5062_v26  ;;  %v2687_v57 = vpop.f32.mrb[49].mxu1  ;;  %v5205_v26 = vrot.slane %v686_v11, %v4949_v53 }
 0x24c   :  { %v2751_v60 = vmul.f32 %v2719_v30, %v5076_v36  ;;  %v2688_v5 = vadd.f32 %v2687_v57, %v5068_v63  ;;  %2794 = vadd.xlane.f32.xlu1 %v2793_v31  ;;  %v5208_v63 = vsub.s32 2, %v4946_v50 }
 0x24d   :  { %v2720_v35 = vmax.f32 %v2686_v62, 0.0 }
 0x24e   :  { %v2721_v6 = vmax.f32 %v2688_v5, 0.0  ;;  %v2796_v38 = vadd.f32 %v2751_v60, %v2750_v25 }
 0x24f   :  { %v2752_v7 = vmul.f32 %v2720_v35, %v5072_v37  ;;  %v5214_v37 = vsub.s32 4, %v4946_v50 }
 0x250   :  { %v2753_v8 = vmul.f32 %v2721_v6, %v5076_v36  ;;  %2797 = vadd.xlane.f32.xlu0 %v2796_v38  ;;  %v5217_v36 = vsub.s32 5, %v4946_v50 }
 0x252   :  { %v2799_v46 = vadd.f32 %v2753_v8, %v2752_v7 }
 0x254   :  { %2800 = vadd.xlane.f32.xlu1 %v2799_v46 }
 0x265   :  { %v637_v55 = vpop.xlane.xlu0 %636 }
 0x266   :  { %v692_v14 = vadd.f32 %v5205_v26, %v637_v55 }
 0x268   :  { %v727_v51 = vrot.slane %v692_v14, %v4949_v53  ;;  %v731_v0 = vrot.slane %v692_v14, %v4955_v54  ;;  %v735_v20 = vrot.slane %v692_v14, %v5208_v63  ;;  %v739_v4 = vrot.slane %v692_v14, %v5211_v45 }
 0x269   :  { %v640_v52 = vpop.xlane.xlu0 %639  ;;  %v743_v21 = vrot.slane %v692_v14, %v5214_v37  ;;  %v747_v24 = vrot.slane %v692_v14, %v5217_v36  ;;  %v751_v19 = vrot.slane %v692_v14, %v5220_v13  ;;  %v755_v28 = vrot.slane %v692_v14, %v5223_v56 }
 0x26a   :  { %v693_v58 = vadd.f32 %v5205_v26, %v640_v52  ;;  %v1236_v29 = vcombine.low %v727_v51, %v731_v0  ;;  %v1237_v23 = vcombine.low %v735_v20, %v739_v4 }
 0x26b   :  { %v1238_v59 = vcombine.low %v743_v21, %v747_v24  ;;  %v1239_v33 = vcombine.low %v751_v19, %v755_v28 }
 0x26c   :  { %v1246_v34 = vrot.slane %v1236_v29, %v5227_v15  ;;  %v1253_v32 = vrot.slane %v1237_v23, %v5227_v15  ;;  %v759_v18 = vrot.slane %v693_v58, %v4949_v53  ;;  %v763_v2 = vrot.slane %v693_v58, %v4955_v54 }
 0x26d   :  { %v643_v39 = vpop.xlane.xlu1 %642  ;;  %v1260_v3 = vrot.slane %v1238_v59, %v5227_v15  ;;  %v1267_v40 = vrot.slane %v1239_v33, %v5227_v15  ;;  %v767_v41 = vrot.slane %v693_v58, %v5208_v63  ;;  %v771_v22 = vrot.slane %v693_v58, %v5211_v45 }
 0x26e   :  { %v694_v9 = vadd.f32 %v5205_v26, %v643_v39  ;;  %v1268_v42 = vcombine.low %v1246_v34, %v1253_v32  ;;  %v775_v10 = vrot.slane %v693_v58, %v5214_v37  ;;  %v779_v27 = vrot.slane %v693_v58, %v5217_v36 }
 0x26f   :  { %v1269_v43 = vcombine.low %v1260_v3, %v1267_v40  ;;  %v783_v48 = vrot.slane %v693_v58, %v5220_v13  ;;  %v787_v16 = vrot.slane %v693_v58, %v5223_v56  ;;  %v1285_v1 = vcombine.low %v759_v18, %v763_v2 }
 0x270   :  { %v1276_v17 = vrot.slane %v1268_v42, %v5227_v15  ;;  %v1286_v30 = vcombine.low %v767_v41, %v771_v22  ;;  %v1287_v61 = vcombine.low %v775_v10, %v779_v27  ;;  %v791_v31 = vrot.slane %v694_v9, %v4949_v53 }
 0x271   :  { %v646_v25 = vpop.xlane.xlu1 %645  ;;  %v1283_v62 = vrot.slane %v1269_v43, %v5227_v15  ;;  %v1288_v57 = vcombine.low %v783_v48, %v787_v16  ;;  %v1295_v60 = vrot.slane %v1285_v1, %v5227_v15  ;;  %v795_v5 = vrot.slane %v694_v9, %v4955_v54 }
 0x272   :  { %v695_v35 = vadd.f32 %v5205_v26, %v646_v25  ;;  %v1302_v6 = vrot.slane %v1286_v30, %v5227_v15  ;;  %v1309_v38 = vrot.slane %v1287_v61, %v5227_v15  ;;  %v799_v7 = vrot.slane %v694_v9, %v5208_v63 }
 0x273   :  { %v1284_v8 = vcombine.low %v1276_v17, %v1283_v62  ;;  %v1316_v46 = vrot.slane %v1288_v57, %v5227_v15  ;;  %v803_v11 = vrot.slane %v694_v9, %v5211_v45  ;;  %v807_v47 = vrot.slane %v694_v9, %v5214_v37 }
 0x274   :  { %v1317_v44 = vcombine.low %v1295_v60, %v1302_v6  ;;  %v811_v12 = vrot.slane %v694_v9, %v5217_v36  ;;  %v815_v55 = vrot.slane %v694_v9, %v5220_v13  ;;  %v819_v14 = vrot.slane %v694_v9, %v5223_v56 }
 0x275   :  { %2021 = vperm.xlu1 %4521, %v1284_v8   ;;  %v649_v51 = vpop.xlane.xlu0 %648  ;;  %v1318_v0 = vcombine.low %v1309_v38, %v1316_v46  ;;  %v1334_v20 = vcombine.low %v791_v31, %v795_v5  ;;  %v1335_v4 = vcombine.low %v799_v7, %v803_v11  ;;  %v823_v52 = vrot.slane %v695_v35, %v4949_v53 }
 0x276   :  { %v696_v21 = vadd.f32 %v5205_v26, %v649_v51  ;;  %v1325_v24 = vrot.slane %v1317_v44, %v5227_v15  ;;  %v1336_v19 = vcombine.low %v807_v47, %v811_v12  ;;  %v1337_v28 = vcombine.low %v815_v55, %v819_v14 }
 0x277   :  { %v1332_v58 = vrot.slane %v1318_v0, %v5227_v15  ;;  %v1344_v29 = vrot.slane %v1334_v20, %v5227_v15  ;;  %v1351_v23 = vrot.slane %v1335_v4, %v5227_v15  ;;  %v827_v59 = vrot.slane %v695_v35, %v4955_v54 }
 0x278   :  { %v1358_v33 = vrot.slane %v1336_v19, %v5227_v15  ;;  %v1365_v34 = vrot.slane %v1337_v28, %v5227_v15  ;;  %v831_v32 = vrot.slane %v695_v35, %v5208_v63  ;;  %v835_v18 = vrot.slane %v695_v35, %v5211_v45 }
 0x279   :  { %v1333_v2 = vcombine.low %v1325_v24, %v1332_v58  ;;  %v652_v39 = vpop.xlane.xlu1 %651  ;;  %v1366_v3 = vcombine.low %v1344_v29, %v1351_v23  ;;  %v839_v40 = vrot.slane %v695_v35, %v5214_v37  ;;  %v843_v41 = vrot.slane %v695_v35, %v5217_v36 }
 0x27a   :  { %v697_v22 = vadd.f32 %v5205_v26, %v652_v39  ;;  %v1367_v9 = vcombine.low %v1358_v33, %v1365_v34  ;;  %v847_v42 = vrot.slane %v695_v35, %v5220_v13  ;;  %v851_v10 = vrot.slane %v695_v35, %v5223_v56 }
 0x27b   :  { %2024 = vperm.xlu1 %4521, %v1333_v2   ;;  %v1374_v27 = vrot.slane %v1366_v3, %v5227_v15  ;;  %v1383_v43 = vcombine.low %v823_v52, %v827_v59  ;;  %v1384_v48 = vcombine.low %v831_v32, %v835_v18  ;;  %v1385_v16 = vcombine.low %v839_v40, %v843_v41 }
 0x27c   :  { %v1381_v1 = vrot.slane %v1367_v9, %v5227_v15  ;;  %v1386_v17 = vcombine.low %v847_v42, %v851_v10  ;;  %v855_v30 = vrot.slane %v696_v21, %v4949_v53  ;;  %v859_v61 = vrot.slane %v696_v21, %v4955_v54 }
 0x27d   :  { %v655_v31 = vpop.xlane.xlu0 %654  ;;  %v1393_v25 = vrot.slane %v1383_v43, %v5227_v15  ;;  %v1400_v62 = vrot.slane %v1384_v48, %v5227_v15  ;;  %v1407_v57 = vrot.slane %v1385_v16, %v5227_v15  ;;  %v863_v60 = vrot.slane %v696_v21, %v5208_v63 }
 0x27e   :  { %v1382_v5 = vcombine.low %v1374_v27, %v1381_v1  ;;  %v5291_v35 = vadd.f32 %v5205_v26, %v655_v31  ;;  %v1414_v6 = vrot.slane %v1386_v17, %v5227_v15  ;;  %v867_v38 = vrot.slane %v696_v21, %v5211_v45 }
 0x27f   :  { %v1415_v7 = vcombine.low %v1393_v25, %v1400_v62  ;;  %v871_v8 = vrot.slane %v696_v21, %v5214_v37  ;;  %v875_v46 = vrot.slane %v696_v21, %v5217_v36  ;;  %v879_v11 = vrot.slane %v696_v21, %v5220_v13 }
 0x280   :  { %2027 = vperm.xlu1 %4521, %v1382_v5   ;;  %v1416_v47 = vcombine.low %v1407_v57, %v1414_v6  ;;  %v883_v44 = vrot.slane %v696_v21, %v5223_v56  ;;  %v1432_v12 = vcombine.low %v855_v30, %v859_v61  ;;  %v1433_v55 = vcombine.low %v863_v60, %v867_v38 }
 0x281   :  { %v1423_v14 = vrot.slane %v1415_v7, %v5227_v15  ;;  %v658_v51 = vpop.xlane.xlu1 %657  ;;  %v1434_v0 = vcombine.low %v871_v8, %v875_v46  ;;  %v887_v20 = vrot.slane %v697_v22, %v4949_v53  ;;  %v891_v4 = vrot.slane %v697_v22, %v4955_v54 }
 0x282   :  { %v1430_v52 = vrot.slane %v1416_v47, %v5227_v15  ;;  %v5304_v24 = vadd.f32 %v5205_v26, %v658_v51  ;;  %v1435_v19 = vcombine.low %v879_v11, %v883_v44  ;;  %v1442_v28 = vrot.slane %v1432_v12, %v5227_v15 }
 0x283   :  { %v1449_v21 = vrot.slane %v1433_v55, %v5227_v15  ;;  %v1456_v58 = vrot.slane %v1434_v0, %v5227_v15  ;;  %v895_v29 = vrot.slane %v697_v22, %v5208_v63  ;;  %v899_v23 = vrot.slane %v697_v22, %v5211_v45 }
 0x284   :  { %v1431_v59 = vcombine.low %v1423_v14, %v1430_v52  ;;  %v1463_v33 = vrot.slane %v1435_v19, %v5227_v15  ;;  %v903_v34 = vrot.slane %v697_v22, %v5214_v37  ;;  %v907_v32 = vrot.slane %v697_v22, %v5217_v36 }
 0x285   :  { %v1464_v18 = vcombine.low %v1442_v28, %v1449_v21  ;;  %v661_v2 = vpop.xlane.xlu0 %660  ;;  %v911_v39 = vrot.slane %v697_v22, %v5220_v13  ;;  %v915_v3 = vrot.slane %v697_v22, %v5223_v56  ;;  %v1481_v40 = vcombine.low %v887_v20, %v891_v4 }
 0x286   :  { %2030 = vperm.xlu1 %4521, %v1431_v59   ;;  %v1465_v41 = vcombine.low %v1456_v58, %v1463_v33  ;;  %v5317_v9 = vadd.f32 %v5205_v26, %v661_v2  ;;  %v1482_v42 = vcombine.low %v895_v29, %v899_v23  ;;  %v1483_v10 = vcombine.low %v903_v34, %v907_v32 }
 0x287   :  { %v1472_v27 = vrot.slane %v1464_v18, %v5227_v15  ;;  %v1484_v43 = vcombine.low %v911_v39, %v915_v3  ;;  %v1491_v48 = vrot.slane %v1481_v40, %v5227_v15  ;;  %v919_v16 = vrot.slane %v5291_v35, %v4949_v53 }
 0x288   :  { %v1479_v1 = vrot.slane %v1465_v41, %v5227_v15  ;;  %v1498_v22 = vrot.slane %v1482_v42, %v5227_v15  ;;  %v1505_v17 = vrot.slane %v1483_v10, %v5227_v15  ;;  %v923_v30 = vrot.slane %v5291_v35, %v4955_v54 }
 0x289   :  { %v1512_v61 = vrot.slane %v1484_v43, %v5227_v15  ;;  %v664_v31 = vpop.xlane.xlu1 %663  ;;  %v927_v25 = vrot.slane %v5291_v35, %v5208_v63  ;;  %v931_v62 = vrot.slane %v5291_v35, %v5211_v45  ;;  %v935_v57 = vrot.slane %v5291_v35, %v5214_v37 }
 0x28a   :  { %v1480_v60 = vcombine.low %v1472_v27, %v1479_v1  ;;  %v1513_v5 = vcombine.low %v1491_v48, %v1498_v22  ;;  %v5336_v6 = vadd.f32 %v5205_v26, %v664_v31  ;;  %v939_v38 = vrot.slane %v5291_v35, %v5217_v36 }
 0x28b   :  { %v1514_v7 = vcombine.low %v1505_v17, %v1512_v61  ;;  %v943_v8 = vrot.slane %v5291_v35, %v5220_v13  ;;  %v947_v46 = vrot.slane %v5291_v35, %v5223_v56  ;;  %v1530_v11 = vcombine.low %v919_v16, %v923_v30 }
 0x28c   :  { %2033 = vperm.xlu1 %4521, %v1480_v60   ;;  %v1521_v47 = vrot.slane %v1513_v5, %v5227_v15  ;;  %v1531_v44 = vcombine.low %v927_v25, %v931_v62  ;;  %v1532_v12 = vcombine.low %v935_v57, %v939_v38  ;;  %v951_v55 = vrot.slane %v5304_v24, %v4949_v53 }
 0x28d   :  { %v1528_v14 = vrot.slane %v1514_v7, %v5227_v15  ;;  %v1533_v51 = vcombine.low %v943_v8, %v947_v46  ;;  %v1540_v0 = vrot.slane %v1530_v11, %v5227_v15  ;;  %v667_v20 = vpop.xlane.xlu0 %666  ;;  %v955_v4 = vrot.slane %v5304_v24, %v4955_v54 }
 0x28e   :  { %v1547_v35 = vrot.slane %v1531_v44, %v5227_v15  ;;  %v1554_v52 = vrot.slane %v1532_v12, %v5227_v15  ;;  %v5354_v19 = vadd.f32 %v5205_v26, %v667_v20  ;;  %v959_v28 = vrot.slane %v5304_v24, %v5208_v63 }
 0x28f   :  { %v1529_v21 = vcombine.low %v1521_v47, %v1528_v14  ;;  %v1561_v58 = vrot.slane %v1533_v51, %v5227_v15  ;;  %v963_v29 = vrot.slane %v5304_v24, %v5211_v45  ;;  %v967_v23 = vrot.slane %v5304_v24, %v5214_v37 }
 0x290   :  { %v1562_v59 = vcombine.low %v1540_v0, %v1547_v35  ;;  %v971_v33 = vrot.slane %v5304_v24, %v5217_v36  ;;  %v975_v34 = vrot.slane %v5304_v24, %v5220_v13  ;;  %v979_v32 = vrot.slane %v5304_v24, %v5223_v56 }
 0x291   :  { %2036 = vperm.xlu0 %4520, %v1529_v21   ;;  %v1563_v18 = vcombine.low %v1554_v52, %v1561_v58  ;;  %v1579_v2 = vcombine.low %v951_v55, %v955_v4  ;;  %v1580_v39 = vcombine.low %v959_v28, %v963_v29  ;;  %v670_v3 = vpop.xlane.xlu1 %669  ;;  %v983_v40 = vrot.slane %v5317_v9, %v4949_v53 }
 0x292   :  { %v1570_v41 = vrot.slane %v1562_v59, %v5227_v15  ;;  %v1581_v42 = vcombine.low %v967_v23, %v971_v33  ;;  %v1582_v10 = vcombine.low %v975_v34, %v979_v32  ;;  %v5373_v27 = vadd.f32 %v5205_v26, %v670_v3 }
 0x293   :  { %v1577_v43 = vrot.slane %v1563_v18, %v5227_v15  ;;  %v1589_v48 = vrot.slane %v1579_v2, %v5227_v15  ;;  %v1596_v24 = vrot.slane %v1580_v39, %v5227_v15  ;;  %v987_v16 = vrot.slane %v5317_v9, %v4955_v54 }
 0x294   :  { %v1603_v1 = vrot.slane %v1581_v42, %v5227_v15  ;;  %v1610_v22 = vrot.slane %v1582_v10, %v5227_v15  ;;  %v991_v17 = vrot.slane %v5317_v9, %v5208_v63  ;;  %v995_v30 = vrot.slane %v5317_v9, %v5211_v45 }
 0x295   :  { %v1578_v61 = vcombine.low %v1570_v41, %v1577_v43  ;;  %v1611_v31 = vcombine.low %v1589_v48, %v1596_v24  ;;  %v999_v25 = vrot.slane %v5317_v9, %v5214_v37  ;;  %v1003_v62 = vrot.slane %v5317_v9, %v5217_v36  ;;  %v673_v57 = vpop.xlane.xlu0 %672 }
 0x296   :  { %v1612_v60 = vcombine.low %v1603_v1, %v1610_v22  ;;  %v1007_v5 = vrot.slane %v5317_v9, %v5220_v13  ;;  %v1011_v38 = vrot.slane %v5317_v9, %v5223_v56  ;;  %v1628_v7 = vcombine.low %v983_v40, %v987_v16 }
 0x297   :  { %2039 = vperm.xlu1 %4521, %v1578_v61   ;;  %v1619_v8 = vrot.slane %v1611_v31, %v5227_v15  ;;  %v1629_v46 = vcombine.low %v991_v17, %v995_v30  ;;  %v1630_v11 = vcombine.low %v999_v25, %v1003_v62  ;;  %v5396_v47 = vadd.f32 %v5205_v26, %v673_v57 }
 0x298   :  { %v1626_v44 = vrot.slane %v1612_v60, %v5227_v15  ;;  %v1631_v12 = vcombine.low %v1007_v5, %v1011_v38  ;;  %v1638_v55 = vrot.slane %v1628_v7, %v5227_v15  ;;  %v1015_v14 = vrot.slane %v5336_v6, %v4949_v53 }
 0x299   :  { %v1645_v51 = vrot.slane %v1629_v46, %v5227_v15  ;;  %v1652_v9 = vrot.slane %v1630_v11, %v5227_v15  ;;  %v1019_v0 = vrot.slane %v5336_v6, %v4955_v54  ;;  %v1023_v20 = vrot.slane %v5336_v6, %v5208_v63  ;;  %v676_v4 = vpop.xlane.xlu1 %675 }
 0x29a   :  { %v1627_v35 = vcombine.low %v1619_v8, %v1626_v44  ;;  %v1659_v52 = vrot.slane %v1631_v12, %v5227_v15  ;;  %v1027_v28 = vrot.slane %v5336_v6, %v5211_v45  ;;  %v1031_v21 = vrot.slane %v5336_v6, %v5214_v37 }
 0x29b   :  { %v1660_v58 = vcombine.low %v1638_v55, %v1645_v51  ;;  %v1035_v29 = vrot.slane %v5336_v6, %v5217_v36  ;;  %v1039_v23 = vrot.slane %v5336_v6, %v5220_v13  ;;  %v1043_v59 = vrot.slane %v5336_v6, %v5223_v56 }
 0x29c   :  { %2042 = vperm.xlu1 %4521, %v1627_v35   ;;  %v1661_v33 = vcombine.low %v1652_v9, %v1659_v52  ;;  %v1677_v34 = vcombine.low %v1015_v14, %v1019_v0  ;;  %v1678_v32 = vcombine.low %v1023_v20, %v1027_v28  ;;  %v5420_v18 = vadd.f32 %v5205_v26, %v676_v4 }
 0x29d   :  { %v1668_v2 = vrot.slane %v1660_v58, %v5227_v15  ;;  %v1679_v39 = vcombine.low %v1031_v21, %v1035_v29  ;;  %v1680_v3 = vcombine.low %v1039_v23, %v1043_v59  ;;  %v1047_v40 = vrot.slane %v5354_v19, %v4949_v53  ;;  %v679_v1 = vpop.xlane.xlu0 %678 }
 0x29e   :  { %v1675_v41 = vrot.slane %v1661_v33, %v5227_v15  ;;  %v1687_v42 = vrot.slane %v1677_v34, %v5227_v15  ;;  %v1694_v6 = vrot.slane %v1678_v32, %v5227_v15  ;;  %v1051_v10 = vrot.slane %v5354_v19, %v4955_v54 }
 0x29f   :  { %v1701_v43 = vrot.slane %v1679_v39, %v5227_v15  ;;  %v1708_v48 = vrot.slane %v1680_v3, %v5227_v15  ;;  %v1055_v24 = vrot.slane %v5354_v19, %v5208_v63  ;;  %v1059_v16 = vrot.slane %v5354_v19, %v5211_v45 }
 0x2a0   :  { %v1676_v22 = vcombine.low %v1668_v2, %v1675_v41  ;;  %v1709_v17 = vcombine.low %v1687_v42, %v1694_v6  ;;  %v1063_v30 = vrot.slane %v5354_v19, %v5214_v37  ;;  %v1067_v61 = vrot.slane %v5354_v19, %v5217_v36 }
 0x2a1   :  { %v1710_v31 = vcombine.low %v1701_v43, %v1708_v48  ;;  %v1071_v25 = vrot.slane %v5354_v19, %v5220_v13  ;;  %v1075_v62 = vrot.slane %v5354_v19, %v5223_v56  ;;  %v1726_v57 = vcombine.low %v1047_v40, %v1051_v10  ;;  %v682_v12 = vpop.xlane.xlu1 %681 }
 0x2a2   :  { %2045 = vperm.xlu0 %4520, %v1676_v22   ;;  %v1717_v60 = vrot.slane %v1709_v17, %v5227_v15  ;;  %v1727_v5 = vcombine.low %v1055_v24, %v1059_v16  ;;  %v1728_v38 = vcombine.low %v1063_v30, %v1067_v61  ;;  %v5446_v7 = vadd.f32 %v5205_v26, %v679_v1 }
 0x2a3   :  { %v1724_v8 = vrot.slane %v1710_v31, %v5227_v15  ;;  %v1729_v46 = vcombine.low %v1071_v25, %v1075_v62  ;;  %v1736_v11 = vrot.slane %v1726_v57, %v5227_v15  ;;  %v1079_v44 = vrot.slane %v5373_v27, %v4949_v53 }
 0x2a4   :  { %v1743_v19 = vrot.slane %v1727_v5, %v5227_v15  ;;  %v1750_v55 = vrot.slane %v1728_v38, %v5227_v15  ;;  %v1083_v14 = vrot.slane %v5373_v27, %v4955_v54  ;;  %v1087_v51 = vrot.slane %v5373_v27, %v5208_v63 }
 0x2a5   :  { %v1725_v9 = vcombine.low %v1717_v60, %v1724_v8  ;;  %v1757_v0 = vrot.slane %v1729_v46, %v5227_v15  ;;  %v1091_v20 = vrot.slane %v5373_v27, %v5211_v45  ;;  %v1095_v4 = vrot.slane %v5373_v27, %v5214_v37  ;;  %v2756_v41 = vpop.xlane.xlu1 %2755 }
 0x2a6   :  { %v1758_v35 = vcombine.low %v1736_v11, %v1743_v19  ;;  %v1099_v52 = vrot.slane %v5373_v27, %v5217_v36  ;;  %v1103_v28 = vrot.slane %v5373_v27, %v5220_v13  ;;  %v1107_v21 = vrot.slane %v5373_v27, %v5223_v56 }
 0x2a7   :  { %2048 = vperm.xlu1 %4521, %v1725_v9   ;;  %v1759_v58 = vcombine.low %v1750_v55, %v1757_v0  ;;  %v1775_v29 = vcombine.low %v1079_v44, %v1083_v14  ;;  %v1776_v23 = vcombine.low %v1087_v51, %v1091_v20  ;;  %v5470_v59 = vadd.f32 %v5205_v26, %v682_v12 }
 0x2a8   :  { %v1766_v33 = vrot.slane %v1758_v35, %v5227_v15  ;;  %v1777_v34 = vcombine.low %v1095_v4, %v1099_v52  ;;  %v1778_v32 = vcombine.low %v1103_v28, %v1107_v21  ;;  %v1111_v2 = vrot.slane %v5396_v47, %v4949_v53 }
 0x2a9   :  { %v1773_v39 = vrot.slane %v1759_v58, %v5227_v15  ;;  %v1785_v3 = vrot.slane %v1775_v29, %v5227_v15  ;;  %v1792_v27 = vrot.slane %v1776_v23, %v5227_v15  ;;  %v1115_v40 = vrot.slane %v5396_v47, %v4955_v54  ;;  %v2759_v19 = vpop.xlane.xlu0 %2758 }
 0x2aa   :  { %v1799_v42 = vrot.slane %v1777_v34, %v5227_v15  ;;  %v1806_v6 = vrot.slane %v1778_v32, %v5227_v15  ;;  %v1119_v10 = vrot.slane %v5396_v47, %v5208_v63  ;;  %v1123_v43 = vrot.slane %v5396_v47, %v5211_v45 }
 0x2ab   :  { %v1774_v48 = vcombine.low %v1766_v33, %v1773_v39  ;;  %v1807_v24 = vcombine.low %v1785_v3, %v1792_v27  ;;  %v1127_v16 = vrot.slane %v5396_v47, %v5214_v37  ;;  %v1131_v1 = vrot.slane %v5396_v47, %v5217_v36 }
 0x2ac   :  { %v1808_v22 = vcombine.low %v1799_v42, %v1806_v6  ;;  %v1135_v17 = vrot.slane %v5396_v47, %v5220_v13  ;;  %v1139_v30 = vrot.slane %v5396_v47, %v5223_v56  ;;  %v1824_v61 = vcombine.low %v1111_v2, %v1115_v40 }
 0x2ad   :  { %2051 = vperm.xlu0 %4520, %v1774_v48   ;;  %v1815_v31 = vrot.slane %v1807_v24, %v5227_v15  ;;  %v1825_v25 = vcombine.low %v1119_v10, %v1123_v43  ;;  %v1826_v62 = vcombine.low %v1127_v16, %v1131_v1  ;;  %v2802_v57 = vadd.f32 %v2756_v41, %v5205_v26  ;;  %v2762_v60 = vpop.xlane.xlu1 %2761 }
 0x2ae   :  { %v1822_v5 = vrot.slane %v1808_v22, %v5227_v15  ;;  %v1827_v38 = vcombine.low %v1135_v17, %v1139_v30  ;;  %v1834_v8 = vrot.slane %v1824_v61, %v5227_v15  ;;  %v1143_v46 = vrot.slane %v5420_v18, %v4949_v53 }
 0x2af   :  { %v1841_v11 = vrot.slane %v1825_v25, %v5227_v15  ;;  %v1848_v47 = vrot.slane %v1826_v62, %v5227_v15  ;;  %v1147_v44 = vrot.slane %v5420_v18, %v4955_v54  ;;  %v1151_v12 = vrot.slane %v5420_v18, %v5208_v63 }
 0x2b0   :  { %v1823_v55 = vcombine.low %v1815_v31, %v1822_v5  ;;  %v1855_v14 = vrot.slane %v1827_v38, %v5227_v15  ;;  %v1155_v51 = vrot.slane %v5420_v18, %v5211_v45  ;;  %v1159_v9 = vrot.slane %v5420_v18, %v5214_v37 }
 0x2b1   :  { %v1856_v0 = vcombine.low %v1834_v8, %v1841_v11  ;;  %v1163_v20 = vrot.slane %v5420_v18, %v5217_v36  ;;  %v1167_v4 = vrot.slane %v5420_v18, %v5220_v13  ;;  %v1171_v35 = vrot.slane %v5420_v18, %v5223_v56  ;;  %v2765_v52 = vpop.xlane.xlu1 %2764 }
 0x2b2   :  { %2054 = vperm.xlu0 %4520, %v1823_v55   ;;  %v1857_v28 = vcombine.low %v1848_v47, %v1855_v14  ;;  %v1873_v21 = vcombine.low %v1143_v46, %v1147_v44  ;;  %v1874_v58 = vcombine.low %v1151_v12, %v1155_v51  ;;  %v2803_v29 = vadd.f32 %v2759_v19, %v5205_v26 }
 0x2b3   :  { %v1864_v23 = vrot.slane %v1856_v0, %v5227_v15  ;;  %v1875_v33 = vcombine.low %v1159_v9, %v1163_v20  ;;  %v1876_v34 = vcombine.low %v1167_v4, %v1171_v35  ;;  %v5520_v32 = vadd.f32 %v2762_v60, %v5205_v26 }
 0x2b4   :  { %v1871_v2 = vrot.slane %v1857_v28, %v5227_v15  ;;  %v1883_v39 = vrot.slane %v1873_v21, %v5227_v15  ;;  %v1890_v18 = vrot.slane %v1874_v58, %v5227_v15  ;;  %v5526_v3 = vadd.f32 %v2765_v52, %v5205_v26 }
 0x2b5   :  { %v1897_v27 = vrot.slane %v1875_v33, %v5227_v15  ;;  %v1904_v40 = vrot.slane %v1876_v34, %v5227_v15  ;;  %v2837_v41 = vrot.slane %v2802_v57, %v4949_v53  ;;  %v2841_v42 = vrot.slane %v2802_v57, %v4955_v54  ;;  %v2768_v24 = vpop.xlane.xlu0 %2767 }
 0x2b6   :  { %v1872_v6 = vcombine.low %v1864_v23, %v1871_v2  ;;  %v1905_v10 = vcombine.low %v1883_v39, %v1890_v18  ;;  %v2845_v43 = vrot.slane %v2802_v57, %v5208_v63  ;;  %v2849_v48 = vrot.slane %v2802_v57, %v5211_v45 }
 0x2b7   :  { %v1906_v16 = vcombine.low %v1897_v27, %v1904_v40  ;;  %v2853_v1 = vrot.slane %v2802_v57, %v5214_v37  ;;  %v2857_v22 = vrot.slane %v2802_v57, %v5217_v36  ;;  %v2861_v17 = vrot.slane %v2802_v57, %v5220_v13 }
 0x2b8   :  { %2057 = vperm.xlu0 %4520, %v1872_v6   ;;  %v1913_v30 = vrot.slane %v1905_v10, %v5227_v15  ;;  %v2865_v61 = vrot.slane %v2802_v57, %v5223_v56  ;;  %v3346_v31 = vcombine.low %v2837_v41, %v2841_v42  ;;  %v3347_v25 = vcombine.low %v2845_v43, %v2849_v48 }
 0x2b9   :  { %v1920_v62 = vrot.slane %v1906_v16, %v5227_v15  ;;  %v3348_v60 = vcombine.low %v2853_v1, %v2857_v22  ;;  %v5541_v5 = vadd.f32 %v2768_v24, %v5205_v26  ;;  %v2869_v38 = vrot.slane %v2803_v29, %v4949_v53  ;;  %v2771_v55 = vpop.xlane.xlu1 %2770 }
 0x2ba   :  { %v3349_v8 = vcombine.low %v2861_v17, %v2865_v61  ;;  %v3356_v46 = vrot.slane %v3346_v31, %v5227_v15  ;;  %v3363_v11 = vrot.slane %v3347_v25, %v5227_v15  ;;  %v2873_v47 = vrot.slane %v2803_v29, %v4955_v54 }
 0x2bb   :  { %v1921_v44 = vcombine.low %v1913_v30, %v1920_v62  ;;  %v3370_v57 = vrot.slane %v3348_v60, %v5227_v15  ;;  %v2877_v12 = vrot.slane %v2803_v29, %v5208_v63  ;;  %v2881_v19 = vrot.slane %v2803_v29, %v5211_v45 }
 0x2bc   :  { %v3377_v14 = vrot.slane %v3349_v8, %v5227_v15  ;;  %v3378_v51 = vcombine.low %v3356_v46, %v3363_v11  ;;  %v2885_v9 = vrot.slane %v2803_v29, %v5214_v37  ;;  %v2889_v0 = vrot.slane %v2803_v29, %v5217_v36 }
 0x2bd   :  { %2060 = vperm.xlu0 %4520, %v1921_v44   ;;  %v2893_v20 = vrot.slane %v2803_v29, %v5220_v13  ;;  %v2897_v4 = vrot.slane %v2803_v29, %v5223_v56  ;;  %v3395_v35 = vcombine.low %v2869_v38, %v2873_v47  ;;  %v3396_v52 = vcombine.low %v2877_v12, %v2881_v19  ;;  %v2774_v43 = vpop.xlane.xlu0 %2773 }
 0x2be   :  { %v3379_v28 = vcombine.low %v3370_v57, %v3377_v14  ;;  %v3386_v21 = vrot.slane %v3378_v51, %v5227_v15  ;;  %v3397_v58 = vcombine.low %v2885_v9, %v2889_v0  ;;  %v5557_v23 = vadd.f32 %v2771_v55, %v5205_v26 }
 0x2bf   :  { %v3398_v33 = vcombine.low %v2893_v20, %v2897_v4  ;;  %v3405_v34 = vrot.slane %v3395_v35, %v5227_v15  ;;  %v3412_v2 = vrot.slane %v3396_v52, %v5227_v15  ;;  %v2901_v39 = vrot.slane %v5520_v32, %v4949_v53 }
 0x2c0   :  { %v3393_v18 = vrot.slane %v3379_v28, %v5227_v15  ;;  %v3419_v29 = vrot.slane %v3397_v58, %v5227_v15  ;;  %v2905_v27 = vrot.slane %v5520_v32, %v4955_v54  ;;  %v2909_v40 = vrot.slane %v5520_v32, %v5208_v63 }
 0x2c1   :  { %v3426_v41 = vrot.slane %v3398_v33, %v5227_v15  ;;  %v3427_v42 = vcombine.low %v3405_v34, %v3412_v2  ;;  %v2913_v6 = vrot.slane %v5520_v32, %v5211_v45  ;;  %v2917_v10 = vrot.slane %v5520_v32, %v5214_v37  ;;  %v2777_v12 = vpop.xlane.xlu1 %2776 }
 0x2c2   :  { %v3394_v48 = vcombine.low %v3386_v21, %v3393_v18  ;;  %v2921_v24 = vrot.slane %v5520_v32, %v5217_v36  ;;  %v2925_v16 = vrot.slane %v5520_v32, %v5220_v13  ;;  %v2929_v1 = vrot.slane %v5520_v32, %v5223_v56 }
 0x2c3   :  { %v3428_v22 = vcombine.low %v3419_v29, %v3426_v41  ;;  %v3435_v17 = vrot.slane %v3427_v42, %v5227_v15  ;;  %v3444_v30 = vcombine.low %v2901_v39, %v2905_v27  ;;  %v3445_v61 = vcombine.low %v2909_v40, %v2913_v6 }
 0x2c4   :  { %4131 = vperm.xlu1 %4521, %v3394_v48   ;;  %v3446_v31 = vcombine.low %v2917_v10, %v2921_v24  ;;  %v3447_v25 = vcombine.low %v2925_v16, %v2929_v1  ;;  %v5582_v62 = vadd.f32 %v2774_v43, %v5205_v26  ;;  %v2933_v60 = vrot.slane %v5526_v3, %v4949_v53 }
 0x2c5   :  { %v3442_v38 = vrot.slane %v3428_v22, %v5227_v15  ;;  %v3454_v8 = vrot.slane %v3444_v30, %v5227_v15  ;;  %v3461_v32 = vrot.slane %v3445_v61, %v5227_v15  ;;  %v2937_v46 = vrot.slane %v5526_v3, %v4955_v54  ;;  %v2780_v27 = vpop.xlane.xlu0 %2779 }
 0x2c6   :  { %v3468_v11 = vrot.slane %v3446_v31, %v5227_v15  ;;  %v3475_v47 = vrot.slane %v3447_v25, %v5227_v15  ;;  %v2941_v44 = vrot.slane %v5526_v3, %v5208_v63  ;;  %v2945_v57 = vrot.slane %v5526_v3, %v5211_v45 }
 0x2c7   :  { %v3443_v19 = vcombine.low %v3435_v17, %v3442_v38  ;;  %v3476_v55 = vcombine.low %v3454_v8, %v3461_v32  ;;  %v2949_v14 = vrot.slane %v5526_v3, %v5214_v37  ;;  %v2953_v51 = vrot.slane %v5526_v3, %v5217_v36 }
 0x2c8   :  { %v3477_v9 = vcombine.low %v3468_v11, %v3475_v47  ;;  %v2957_v0 = vrot.slane %v5526_v3, %v5220_v13  ;;  %v2961_v20 = vrot.slane %v5526_v3, %v5223_v56  ;;  %v3493_v4 = vcombine.low %v2933_v60, %v2937_v46 }
 0x2c9   :  { %4134 = vperm.xlu0 %4520, %v3443_v19   ;;  %v3484_v35 = vrot.slane %v3476_v55, %v5227_v15  ;;  %v3494_v52 = vcombine.low %v2941_v44, %v2945_v57  ;;  %v3495_v28 = vcombine.low %v2949_v14, %v2953_v51  ;;  %v5607_v21 = vadd.f32 %v2777_v12, %v5205_v26  ;;  %v2783_v44 = vpop.xlane.xlu1 %2782 }
 0x2ca   :  { %v3491_v58 = vrot.slane %v3477_v9, %v5227_v15  ;;  %v3496_v33 = vcombine.low %v2957_v0, %v2961_v20  ;;  %v3503_v34 = vrot.slane %v3493_v4, %v5227_v15  ;;  %v2965_v2 = vrot.slane %v5541_v5, %v4949_v53 }
 0x2cb   :  { %v3510_v39 = vrot.slane %v3494_v52, %v5227_v15  ;;  %v3517_v3 = vrot.slane %v3495_v28, %v5227_v15  ;;  %v2969_v18 = vrot.slane %v5541_v5, %v4955_v54  ;;  %v2973_v29 = vrot.slane %v5541_v5, %v5208_v63 }
 0x2cc   :  { %v3492_v40 = vcombine.low %v3484_v35, %v3491_v58  ;;  %v3524_v41 = vrot.slane %v3496_v33, %v5227_v15  ;;  %v2977_v42 = vrot.slane %v5541_v5, %v5211_v45  ;;  %v2981_v6 = vrot.slane %v5541_v5, %v5214_v37 }
 0x2cd   :  { %v3525_v10 = vcombine.low %v3503_v34, %v3510_v39  ;;  %v2985_v43 = vrot.slane %v5541_v5, %v5217_v36  ;;  %v2989_v48 = vrot.slane %v5541_v5, %v5220_v13  ;;  %v2993_v24 = vrot.slane %v5541_v5, %v5223_v56 }
 0x2ce   :  { %4137 = vperm.xlu1 %4521, %v3492_v40   ;;  %v3526_v16 = vcombine.low %v3517_v3, %v3524_v41  ;;  %v3542_v1 = vcombine.low %v2965_v2, %v2969_v18  ;;  %v3543_v22 = vcombine.low %v2973_v29, %v2977_v42  ;;  %v5631_v17 = vadd.f32 %v2780_v27, %v5205_v26  ;;  %v2786_v18 = vpop.xlane.xlu0 %2785 }
 0x2cf   :  { %v3533_v30 = vrot.slane %v3525_v10, %v5227_v15  ;;  %v3544_v61 = vcombine.low %v2981_v6, %v2985_v43  ;;  %v3545_v31 = vcombine.low %v2989_v48, %v2993_v24  ;;  %v2997_v25 = vrot.slane %v5557_v23, %v4949_v53 }
 0x2d0   :  { %v3540_v60 = vrot.slane %v3526_v16, %v5227_v15  ;;  %v3552_v38 = vrot.slane %v3542_v1, %v5227_v15  ;;  %v3559_v5 = vrot.slane %v3543_v22, %v5227_v15  ;;  %v3001_v8 = vrot.slane %v5557_v23, %v4955_v54 }
 0x2d1   :  { %v3566_v32 = vrot.slane %v3544_v61, %v5227_v15  ;;  %v3573_v46 = vrot.slane %v3545_v31, %v5227_v15  ;;  %v3005_v11 = vrot.slane %v5557_v23, %v5208_v63  ;;  %v3009_v47 = vrot.slane %v5557_v23, %v5211_v45 }
 0x2d2   :  { %v3541_v57 = vcombine.low %v3533_v30, %v3540_v60  ;;  %v3574_v12 = vcombine.low %v3552_v38, %v3559_v5  ;;  %v3013_v19 = vrot.slane %v5557_v23, %v5214_v37  ;;  %v3017_v55 = vrot.slane %v5557_v23, %v5217_v36 }
 0x2d3   :  { %v3575_v14 = vcombine.low %v3566_v32, %v3573_v46  ;;  %v3021_v51 = vrot.slane %v5557_v23, %v5220_v13  ;;  %v3025_v9 = vrot.slane %v5557_v23, %v5223_v56  ;;  %v3591_v0 = vcombine.low %v2997_v25, %v3001_v8 }
 0x2d4   :  { %4140 = vperm.xlu0 %4520, %v3541_v57   ;;  %v3582_v20 = vrot.slane %v3574_v12, %v5227_v15  ;;  %v3592_v4 = vcombine.low %v3005_v11, %v3009_v47  ;;  %v3593_v35 = vcombine.low %v3013_v19, %v3017_v55  ;;  %v5657_v52 = vadd.f32 %v2783_v44, %v5205_v26  ;;  %v2789_v11 = vpop.xlane.xlu1 %2788 }
 0x2d5   :  { %v3589_v28 = vrot.slane %v3575_v14, %v5227_v15  ;;  %v3594_v58 = vcombine.low %v3021_v51, %v3025_v9  ;;  %v3601_v33 = vrot.slane %v3591_v0, %v5227_v15  ;;  %v3029_v34 = vrot.slane %v5582_v62, %v4949_v53 }
 0x2d6   :  { %v3608_v2 = vrot.slane %v3592_v4, %v5227_v15  ;;  %v3615_v23 = vrot.slane %v3593_v35, %v5227_v15  ;;  %v3033_v39 = vrot.slane %v5582_v62, %v4955_v54  ;;  %v3037_v3 = vrot.slane %v5582_v62, %v5208_v63 }
 0x2d7   :  { %v3590_v29 = vcombine.low %v3582_v20, %v3589_v28  ;;  %v3622_v27 = vrot.slane %v3594_v58, %v5227_v15  ;;  %v3041_v40 = vrot.slane %v5582_v62, %v5211_v45  ;;  %v3045_v41 = vrot.slane %v5582_v62, %v5214_v37 }
 0x2d8   :  { %v3623_v42 = vcombine.low %v3601_v33, %v3608_v2  ;;  %v3049_v6 = vrot.slane %v5582_v62, %v5217_v36  ;;  %v3053_v10 = vrot.slane %v5582_v62, %v5220_v13  ;;  %v3057_v43 = vrot.slane %v5582_v62, %v5223_v56 }
 0x2d9   :  { %4143 = vperm.xlu1 %4521, %v3590_v29   ;;  %v3624_v48 = vcombine.low %v3615_v23, %v3622_v27  ;;  %v3640_v24 = vcombine.low %v3029_v34, %v3033_v39  ;;  %v3641_v16 = vcombine.low %v3037_v3, %v3041_v40  ;;  %v5681_v1 = vadd.f32 %v2786_v18, %v5205_v26  ;;  %v2792_v39 = vpop.xlane.xlu0 %2791 }
 0x2da   :  { %v3631_v22 = vrot.slane %v3623_v42, %v5227_v15  ;;  %v3642_v30 = vcombine.low %v3045_v41, %v3049_v6  ;;  %v3643_v61 = vcombine.low %v3053_v10, %v3057_v43  ;;  %v3061_v31 = vrot.slane %v5607_v21, %v4949_v53 }
 0x2db   :  { %v3638_v25 = vrot.slane %v3624_v48, %v5227_v15  ;;  %v3650_v60 = vrot.slane %v3640_v24, %v5227_v15  ;;  %v3657_v62 = vrot.slane %v3641_v16, %v5227_v15  ;;  %v3065_v38 = vrot.slane %v5607_v21, %v4955_v54 }
 0x2dc   :  { %v3664_v5 = vrot.slane %v3642_v30, %v5227_v15  ;;  %v3671_v8 = vrot.slane %v3643_v61, %v5227_v15  ;;  %v3069_v32 = vrot.slane %v5607_v21, %v5208_v63  ;;  %v3073_v46 = vrot.slane %v5607_v21, %v5211_v45 }
 0x2dd   :  { %v3639_v47 = vcombine.low %v3631_v22, %v3638_v25  ;;  %v3672_v44 = vcombine.low %v3650_v60, %v3657_v62  ;;  %v3077_v57 = vrot.slane %v5607_v21, %v5214_v37  ;;  %v3081_v12 = vrot.slane %v5607_v21, %v5217_v36 }
 0x2de   :  { %v3673_v19 = vcombine.low %v3664_v5, %v3671_v8  ;;  %v3085_v55 = vrot.slane %v5607_v21, %v5220_v13  ;;  %v3089_v14 = vrot.slane %v5607_v21, %v5223_v56  ;;  %v3689_v51 = vcombine.low %v3061_v31, %v3065_v38 }
 0x2df   :  { %4146 = vperm.xlu0 %4520, %v3639_v47   ;;  %v3680_v9 = vrot.slane %v3672_v44, %v5227_v15  ;;  %v3690_v0 = vcombine.low %v3069_v32, %v3073_v46  ;;  %v3691_v20 = vcombine.low %v3077_v57, %v3081_v12  ;;  %v5707_v4 = vadd.f32 %v2789_v11, %v5205_v26  ;;  %v2795_v32 = vpop.xlane.xlu1 %2794 }
 0x2e0   :  { %v3687_v35 = vrot.slane %v3673_v19, %v5227_v15  ;;  %v3692_v28 = vcombine.low %v3085_v55, %v3089_v14  ;;  %v3699_v58 = vrot.slane %v3689_v51, %v5227_v15  ;;  %v3093_v33 = vrot.slane %v5631_v17, %v4949_v53 }
 0x2e1   :  { %v3706_v34 = vrot.slane %v3690_v0, %v5227_v15  ;;  %v3713_v21 = vrot.slane %v3691_v20, %v5227_v15  ;;  %v3097_v2 = vrot.slane %v5631_v17, %v4955_v54  ;;  %v3101_v23 = vrot.slane %v5631_v17, %v5208_v63 }
 0x2e2   :  { %v3688_v3 = vcombine.low %v3680_v9, %v3687_v35  ;;  %v3720_v18 = vrot.slane %v3692_v28, %v5227_v15  ;;  %v3105_v29 = vrot.slane %v5631_v17, %v5211_v45  ;;  %v3109_v27 = vrot.slane %v5631_v17, %v5214_v37 }
 0x2e3   :  { %v3721_v40 = vcombine.low %v3699_v58, %v3706_v34  ;;  %v3113_v41 = vrot.slane %v5631_v17, %v5217_v36  ;;  %v3117_v42 = vrot.slane %v5631_v17, %v5220_v13  ;;  %v3121_v6 = vrot.slane %v5631_v17, %v5223_v56 }
 0x2e4   :  { %4149 = vperm.xlu1 %4521, %v3688_v3   ;;  %v3722_v10 = vcombine.low %v3713_v21, %v3720_v18  ;;  %v3738_v43 = vcombine.low %v3093_v33, %v3097_v2  ;;  %v3739_v48 = vcombine.low %v3101_v23, %v3105_v29  ;;  %v5731_v24 = vadd.f32 %v2792_v39, %v5205_v26 }
 0x2e5   :  { %v3729_v16 = vrot.slane %v3721_v40, %v5227_v15  ;;  %v3740_v22 = vcombine.low %v3109_v27, %v3113_v41  ;;  %v3741_v30 = vcombine.low %v3117_v42, %v3121_v6  ;;  %v3125_v61 = vrot.slane %v5657_v52, %v4949_v53 }
 0x2e6   :  { %v3736_v31 = vrot.slane %v3722_v10, %v5227_v15  ;;  %v3748_v25 = vrot.slane %v3738_v43, %v5227_v15  ;;  %v3755_v17 = vrot.slane %v3739_v48, %v5227_v15  ;;  %v3129_v60 = vrot.slane %v5657_v52, %v4955_v54 }
 0x2e7   :  { %v3762_v62 = vrot.slane %v3740_v22, %v5227_v15  ;;  %v3769_v38 = vrot.slane %v3741_v30, %v5227_v15  ;;  %v3133_v5 = vrot.slane %v5657_v52, %v5208_v63  ;;  %v3137_v8 = vrot.slane %v5657_v52, %v5211_v45 }
 0x2e8   :  { %v3737_v46 = vcombine.low %v3729_v16, %v3736_v31  ;;  %v3770_v11 = vcombine.low %v3748_v25, %v3755_v17  ;;  %v3141_v47 = vrot.slane %v5657_v52, %v5214_v37  ;;  %v3145_v44 = vrot.slane %v5657_v52, %v5217_v36 }
 0x2e9   :  { %v3771_v57 = vcombine.low %v3762_v62, %v3769_v38  ;;  %v3149_v12 = vrot.slane %v5657_v52, %v5220_v13  ;;  %v3153_v19 = vrot.slane %v5657_v52, %v5223_v56  ;;  %v3787_v55 = vcombine.low %v3125_v61, %v3129_v60  ;;  %v2798_v38 = vpop.xlane.xlu0 %2797 }
 0x2ea   :  { %4152 = vperm.xlu0 %4520, %v3737_v46   ;;  %v3778_v14 = vrot.slane %v3770_v11, %v5227_v15  ;;  %v3788_v51 = vcombine.low %v3133_v5, %v3137_v8  ;;  %v3789_v9 = vcombine.low %v3141_v47, %v3145_v44  ;;  %v5757_v0 = vadd.f32 %v2795_v32, %v5205_v26 }
 0x2eb   :  { %v3785_v20 = vrot.slane %v3771_v57, %v5227_v15  ;;  %v3790_v35 = vcombine.low %v3149_v12, %v3153_v19  ;;  %v3797_v28 = vrot.slane %v3787_v55, %v5227_v15  ;;  %v1175_v58 = vrot.slane %v5446_v7, %v4949_v53 }
 0x2ec   :  { %v3804_v33 = vrot.slane %v3788_v51, %v5227_v15  ;;  %v3811_v52 = vrot.slane %v3789_v9, %v5227_v15  ;;  %v1179_v34 = vrot.slane %v5446_v7, %v4955_v54  ;;  %v1183_v21 = vrot.slane %v5446_v7, %v5208_v63 }
 0x2ed   :  { %v3786_v2 = vcombine.low %v3778_v14, %v3785_v20  ;;  %v3818_v23 = vrot.slane %v3790_v35, %v5227_v15  ;;  %v1187_v39 = vrot.slane %v5446_v7, %v5211_v45  ;;  %v1191_v3 = vrot.slane %v5446_v7, %v5214_v37 }
 0x2ee   :  { %v3819_v18 = vcombine.low %v3797_v28, %v3804_v33  ;;  %v1195_v29 = vrot.slane %v5446_v7, %v5217_v36  ;;  %v1199_v27 = vrot.slane %v5446_v7, %v5220_v13  ;;  %v1203_v40 = vrot.slane %v5446_v7, %v5223_v56 }
 0x2ef   :  { %4155 = vperm.xlu1 %4521, %v3786_v2   ;;  %v3820_v41 = vcombine.low %v3811_v52, %v3818_v23  ;;  %v1922_v42 = vcombine.low %v1175_v58, %v1179_v34  ;;  %v1923_v6 = vcombine.low %v1183_v21, %v1187_v39  ;;  %v3157_v10 = vrot.slane %v5681_v1, %v4949_v53 }
 0x2f0   :  { %v3827_v43 = vrot.slane %v3819_v18, %v5227_v15  ;;  %v1924_v48 = vcombine.low %v1191_v3, %v1195_v29  ;;  %v1925_v16 = vcombine.low %v1199_v27, %v1203_v40  ;;  %v3161_v22 = vrot.slane %v5681_v1, %v4955_v54 }
 0x2f1   :  { %v3834_v30 = vrot.slane %v3820_v41, %v5227_v15  ;;  %v1932_v61 = vrot.slane %v1922_v42, %v5227_v15  ;;  %v1939_v7 = vrot.slane %v1923_v6, %v5227_v15  ;;  %v3165_v31 = vrot.slane %v5681_v1, %v5208_v63 }
 0x2f2   :  { %v1946_v25 = vrot.slane %v1924_v48, %v5227_v15  ;;  %v1953_v17 = vrot.slane %v1925_v16, %v5227_v15  ;;  %v3169_v60 = vrot.slane %v5681_v1, %v5211_v45  ;;  %v3173_v62 = vrot.slane %v5681_v1, %v5214_v37 }
 0x2f3   :  { %v3835_v5 = vcombine.low %v3827_v43, %v3834_v30  ;;  %v1954_v8 = vcombine.low %v1932_v61, %v1939_v7  ;;  %v3177_v32 = vrot.slane %v5681_v1, %v5217_v36  ;;  %v3181_v46 = vrot.slane %v5681_v1, %v5220_v13 }
 0x2f4   :  { %v1955_v11 = vcombine.low %v1946_v25, %v1953_v17  ;;  %v3185_v47 = vrot.slane %v5681_v1, %v5223_v56  ;;  %v3836_v44 = vcombine.low %v3157_v10, %v3161_v22  ;;  %v3837_v57 = vcombine.low %v3165_v31, %v3169_v60  ;;  %v2801_v25 = vpop.xlane.xlu1 %2800 }
 0x2f5   :  { %4158 = vperm.xlu0 %4520, %v3835_v5   ;;  %v1962_v12 = vrot.slane %v1954_v8, %v5227_v15  ;;  %v3838_v19 = vcombine.low %v3173_v62, %v3177_v32  ;;  %v5804_v55 = vadd.f32 %v2798_v38, %v5205_v26  ;;  %v1207_v14 = vrot.slane %v5470_v59, %v4949_v53 }
 0x2f6   :  { %v1969_v51 = vrot.slane %v1955_v11, %v5227_v15  ;;  %v3839_v9 = vcombine.low %v3181_v46, %v3185_v47  ;;  %v3846_v20 = vrot.slane %v3836_v44, %v5227_v15  ;;  %v3853_v35 = vrot.slane %v3837_v57, %v5227_v15 }
 0x2f7   :  { %v3860_v1 = vrot.slane %v3838_v19, %v5227_v15  ;;  %v1211_v28 = vrot.slane %v5470_v59, %v4955_v54  ;;  %v1215_v58 = vrot.slane %v5470_v59, %v5208_v63  ;;  %v1219_v33 = vrot.slane %v5470_v59, %v5211_v45 }
 0x2f8   :  { %v1970_v52 = vcombine.low %v1962_v12, %v1969_v51  ;;  %v3867_v34 = vrot.slane %v3839_v9, %v5227_v15  ;;  %v3868_v21 = vcombine.low %v3846_v20, %v3853_v35  ;;  %v1223_v2 = vrot.slane %v5470_v59, %v5214_v37 }
 0x2f9   :  { %v1227_v23 = vrot.slane %v5470_v59, %v5217_v36  ;;  %v1231_v39 = vrot.slane %v5470_v59, %v5220_v13  ;;  %v1235_v3 = vrot.slane %v5470_v59, %v5223_v56  ;;  %v1971_v18 = vcombine.low %v1207_v14, %v1211_v28 }
 0x2fa   :  { %2063 = vperm.xlu0 %4520, %v1970_v52   ;;  %v3869_v29 = vcombine.low %v3860_v1, %v3867_v34  ;;  %v3876_v27 = vrot.slane %v3868_v21, %v5227_v15  ;;  %v1972_v40 = vcombine.low %v1215_v58, %v1219_v33  ;;  %v3189_v41 = vrot.slane %v5707_v4, %v4949_v53 }
 0x2fb   :  { %v1973_v42 = vcombine.low %v1223_v2, %v1227_v23  ;;  %v1974_v6 = vcombine.low %v1231_v39, %v1235_v3  ;;  %v1981_v10 = vrot.slane %v1971_v18, %v5227_v15  ;;  %v3193_v43 = vrot.slane %v5707_v4, %v4955_v54 }
 0x2fc   :  { %v3883_v48 = vrot.slane %v3869_v29, %v5227_v15  ;;  %v1988_v59 = vrot.slane %v1972_v40, %v5227_v15  ;;  %v3197_v16 = vrot.slane %v5707_v4, %v5208_v63  ;;  %v3201_v22 = vrot.slane %v5707_v4, %v5211_v45 }
 0x2fd   :  { %v1995_v30 = vrot.slane %v1973_v42, %v5227_v15  ;;  %v2002_v61 = vrot.slane %v1974_v6, %v5227_v15  ;;  %v3205_v7 = vrot.slane %v5707_v4, %v5214_v37  ;;  %v3209_v31 = vrot.slane %v5707_v4, %v5217_v36 }
 0x2fe   :  { %v3884_v17 = vcombine.low %v3876_v27, %v3883_v48  ;;  %v2003_v60 = vcombine.low %v1981_v10, %v1988_v59  ;;  %v3213_v62 = vrot.slane %v5707_v4, %v5220_v13  ;;  %v3217_v38 = vrot.slane %v5707_v4, %v5223_v56 }
 0x2ff   :  { %v2004_v5 = vcombine.low %v1995_v30, %v2002_v61  ;;  %v3885_v8 = vcombine.low %v3189_v41, %v3193_v43  ;;  %v3886_v32 = vcombine.low %v3197_v16, %v3201_v22  ;;  %v3887_v46 = vcombine.low %v3205_v7, %v3209_v31 }
 0x300   :  { %4161 = vperm.xlu1 %4521, %v3884_v17   ;;  %v2011_v11 = vrot.slane %v2003_v60, %v5227_v15  ;;  %v3888_v47 = vcombine.low %v3213_v62, %v3217_v38  ;;  %v5851_v44 = vadd.f32 %v2801_v25, %v5205_v26  ;;  %v3221_v57 = vrot.slane %v5731_v24, %v4949_v53 }
 0x301   :  { %v2018_v12 = vrot.slane %v2004_v5, %v5227_v15  ;;  %v3895_v19 = vrot.slane %v3885_v8, %v5227_v15  ;;  %v3902_v4 = vrot.slane %v3886_v32, %v5227_v15  ;;  %v3909_v14 = vrot.slane %v3887_v46, %v5227_v15 }
 0x302   :  { %v3916_v51 = vrot.slane %v3888_v47, %v5227_v15  ;;  %v3225_v9 = vrot.slane %v5731_v24, %v4955_v54  ;;  %v3229_v26 = vrot.slane %v5731_v24, %v5208_v63  ;;  %v3233_v20 = vrot.slane %v5731_v24, %v5211_v45 }
 0x303   :  { %v2019_v35 = vcombine.low %v2011_v11, %v2018_v12  ;;  %v3917_v1 = vcombine.low %v3895_v19, %v3902_v4  ;;  %v3237_v28 = vrot.slane %v5731_v24, %v5214_v37  ;;  %v3241_v58 = vrot.slane %v5731_v24, %v5217_v36 }
 0x304   :  { %v3918_v33 = vcombine.low %v3909_v14, %v3916_v51  ;;  %v3245_v52 = vrot.slane %v5731_v24, %v5220_v13  ;;  %v3249_v34 = vrot.slane %v5731_v24, %v5223_v56  ;;  %v3934_v21 = vcombine.low %v3221_v57, %v3225_v9 }
 0x305   :  { %2066 = vperm.xlu0 %4520, %v2019_v35   ;;  %v3925_v2 = vrot.slane %v3917_v1, %v5227_v15  ;;  %v3935_v23 = vcombine.low %v3229_v26, %v3233_v20  ;;  %v3936_v39 = vcombine.low %v3237_v28, %v3241_v58  ;;  %v3253_v3 = vrot.slane %v5757_v0, %v4949_v53 }
 0x306   :  { %v3932_v18 = vrot.slane %v3918_v33, %v5227_v15  ;;  %v3937_v29 = vcombine.low %v3245_v52, %v3249_v34  ;;  %v3944_v27 = vrot.slane %v3934_v21, %v5227_v15  ;;  %v3257_v40 = vrot.slane %v5757_v0, %v4955_v54 }
 0x307   :  { %v3951_v41 = vrot.slane %v3935_v23, %v5227_v15  ;;  %v3958_v24 = vrot.slane %v3936_v39, %v5227_v15  ;;  %v3261_v42 = vrot.slane %v5757_v0, %v5208_v63  ;;  %v3265_v6 = vrot.slane %v5757_v0, %v5211_v45 }
 0x308   :  { %v3933_v10 = vcombine.low %v3925_v2, %v3932_v18  ;;  %v3965_v43 = vrot.slane %v3937_v29, %v5227_v15  ;;  %v3269_v48 = vrot.slane %v5757_v0, %v5214_v37  ;;  %v3273_v59 = vrot.slane %v5757_v0, %v5217_v36 }
 0x309   :  { %v3966_v16 = vcombine.low %v3944_v27, %v3951_v41  ;;  %v3277_v22 = vrot.slane %v5757_v0, %v5220_v13  ;;  %v3281_v30 = vrot.slane %v5757_v0, %v5223_v56  ;;  %v3983_v61 = vcombine.low %v3253_v3, %v3257_v40 }
 0x30a   :  { %4164 = vperm.xlu1 %4521, %v3933_v10   ;;  %v3967_v7 = vcombine.low %v3958_v24, %v3965_v43  ;;  %v3984_v31 = vcombine.low %v3261_v42, %v3265_v6  ;;  %v3985_v25 = vcombine.low %v3269_v48, %v3273_v59  ;;  %v3285_v17 = vrot.slane %v5804_v55, %v4949_v53 }
 0x30b   :  { %v3974_v60 = vrot.slane %v3966_v16, %v5227_v15  ;;  %v3986_v62 = vcombine.low %v3277_v22, %v3281_v30  ;;  %v3993_v38 = vrot.slane %v3983_v61, %v5227_v15  ;;  %v3289_v5 = vrot.slane %v5804_v55, %v4955_v54  ;;  %v2022_v22 = vpop.permute.xlu1 %2021 }
 0x30c   :  { %v3981_v8 = vrot.slane %v3967_v7, %v5227_v15  ;;  %v4000_v0 = vrot.slane %v3984_v31, %v5227_v15  ;;  %v4007_v32 = vrot.slane %v3985_v25, %v5227_v15  ;;  %v3293_v46 = vrot.slane %v5804_v55, %v5208_v63 }
 0x30d   :  { %v4014_v11 = vrot.slane %v3986_v62, %v5227_v15  ;;  %v3297_v47 = vrot.slane %v5804_v55, %v5211_v45  ;;  %v3301_v57 = vrot.slane %v5804_v55, %v5214_v37  ;;  %v3305_v12 = vrot.slane %v5804_v55, %v5217_v36 }
 0x30e   :  { %v3982_v19 = vcombine.low %v3974_v60, %v3981_v8  ;;  %v4015_v4 = vcombine.low %v3993_v38, %v4000_v0  ;;  %v3309_v14 = vrot.slane %v5804_v55, %v5220_v13  ;;  %v3313_v51 = vrot.slane %v5804_v55, %v5223_v56 }
 0x30f   :  { %v4016_v9 = vcombine.low %v4007_v32, %v4014_v11  ;;  %v4032_v26 = vcombine.low %v3285_v17, %v3289_v5  ;;  %v4033_v20 = vcombine.low %v3293_v46, %v3297_v47  ;;  %v4034_v35 = vcombine.low %v3301_v57, %v3305_v12  ;;  %v2025_v61 = vpop.permute.xlu1 %2024 }
 0x310   :  { %4167 = vperm.xlu1 %4521, %v3982_v19   ;;  %v4023_v1 = vrot.slane %v4015_v4, %v5227_v15  ;;  %v4035_v28 = vcombine.low %v3309_v14, %v3313_v51  ;;  %v3317_v58 = vrot.slane %v5851_v44, %v4949_v53  ;;  %v3321_v33 = vrot.slane %v5851_v44, %v4955_v54  ;;  %v5948_v30 = vpop.permute.xlu0 %2036 }
 0x311   :  { %v4030_v52 = vrot.slane %v4016_v9, %v5227_v15  ;;  %v4042_v34 = vrot.slane %v4032_v26, %v5227_v15  ;;  %v4049_v55 = vrot.slane %v4033_v20, %v5227_v15  ;;  %v4056_v21 = vrot.slane %v4034_v35, %v5227_v15 }
 0x312   :  { %v4063_v2 = vrot.slane %v4035_v28, %v5227_v15  ;;  %v3325_v23 = vrot.slane %v5851_v44, %v5208_v63  ;;  %v3329_v39 = vrot.slane %v5851_v44, %v5211_v45  ;;  %v3333_v53 = vrot.slane %v5851_v44, %v5214_v37 }
 0x313   :  { %v4031_v54 = vcombine.low %v4023_v1, %v4030_v52  ;;  %v4064_v3 = vcombine.low %v4042_v34, %v4049_v55  ;;  %v3337_v18 = vrot.slane %v5851_v44, %v5217_v36  ;;  %v3341_v29 = vrot.slane %v5851_v44, %v5220_v13  ;;  %v2028_v31 = vpop.permute.xlu1 %2027 }
 0x314   :  { %v4065_v27 = vcombine.low %v4056_v21, %v4063_v2  ;;  %v3345_v40 = vrot.slane %v5851_v44, %v5223_v56  ;;  %v4081_v41 = vcombine.low %v3317_v58, %v3321_v33  ;;  %v4082_v63 = vcombine.low %v3325_v23, %v3329_v39 }
 0x315   :  { %4170 = vperm.xlu1 %4521, %v4031_v54   ;;  %v4072_v45 = vrot.slane %v4064_v3, %v5227_v15  ;;  %v4083_v24 = vcombine.low %v3333_v53, %v3337_v18  ;;  %v2069_v46 = vand.u32 127, %v72_v49 }
 0x316   :  { %v4079_v37 = vrot.slane %v4065_v27, %v5227_v15  ;;  %v4084_v42 = vcombine.low %v3341_v29, %v3345_v40  ;;  %v4091_v6 = vrot.slane %v4081_v41, %v5227_v15  ;;  %v4098_v36 = vrot.slane %v4082_v63, %v5227_v15 }
 0x317   :  { %v4105_v10 = vrot.slane %v4083_v24, %v5227_v15  ;;  %v2031_v17 = vpop.permute.xlu1 %2030  ;;  %v2074_v47 = vadd.s32 4294967288, %v2069_v46  ;;  %v2081_v12 = vadd.s32 4294967280, %v2069_v46  ;;  %v2088_v19 = vadd.s32 4294967272, %v2069_v46 }
 0x318   :  { %v4080_v13 = vcombine.low %v4072_v45, %v4079_v37  ;;  %v4112_v43 = vrot.slane %v4084_v42, %v5227_v15  ;;  %v4113_v48 = vcombine.low %v4091_v6, %v4098_v36  ;;  %v2095_v51 = vadd.s32 4294967264, %v2069_v46 }
 0x319   :  { %v5974_v14 = vsub.s32 %v2074_v47, %v4946_v50  ;;  %v5979_v26 = vsub.s32 %v2069_v46, %v4946_v50  ;;  %v2102_v20 = vadd.s32 4294967256, %v2069_v46  ;;  %v5982_v35 = vsub.s32 %v2081_v12, %v4946_v50 }
 0x31a   :  { %4173 = vperm.xlu1 %4521, %v4080_v13   ;;  %v4114_v56 = vcombine.low %v4105_v10, %v4112_v43  ;;  %v4121_v44 = vrot.slane %v4113_v48, %v5227_v15  ;;  %v2109_v1 = vadd.s32 4294967248, %v2069_v46  ;;  %v5985_v28 = vsub.s32 %v2088_v19, %v4946_v50 }
 0x31b   :  { %v2034_v62 = vpop.permute.xlu1 %2033  ;;  %v2116_v58 = vadd.s32 4294967240, %v2069_v46  ;;  %v2078_v52 = vrot.slane %v2025_v61, %v5974_v14  ;;  %v5991_v34 = vsub.s32 %v2095_v51, %v4946_v50  ;;  %v2123_v55 = vadd.s32 4294967232, %v2069_v46 }
 0x31c   :  { %v4128_v59 = vrot.slane %v4114_v56, %v5227_v15  ;;  %v2073_v2 = vrot.slane %v2022_v22, %v5979_v26  ;;  %v5997_v23 = vsub.s32 %v2102_v20, %v4946_v50  ;;  %v2130_v39 = vadd.s32 4294967224, %v2069_v46 }
 0x31d   :  { %v2085_v53 = vrot.slane %v2028_v31, %v5982_v35  ;;  %v6001_v54 = vsub.s32 %v2109_v1, %v4946_v50  ;;  %v2137_v3 = vadd.s32 4294967216, %v2069_v46  ;;  %v2092_v18 = vrot.slane %v2031_v17, %v5985_v28 }
 0x31e   :  { %v4129_v16 = vcombine.low %v4121_v44, %v4128_v59  ;;  %v6005_v29 = vsub.s32 %v2116_v58, %v4946_v50  ;;  %v2144_v27 = vadd.s32 4294967208, %v2069_v46  ;;  %v2080_v41 = vsel %vm2079_vm1, %v2078_v52, %v2073_v2 }
 0x31f   :  { %v5958_v5 = vpop.permute.xlu1 %2039  ;;  %v2099_v63 = vrot.slane %v2034_v62, %v5991_v34  ;;  %v6012_v45 = vsub.s32 %v2123_v55, %v4946_v50  ;;  %v2151_v24 = vadd.s32 4294967200, %v2069_v46  ;;  %v2106_v42 = vrot.slane %v5948_v30, %v5997_v23 }
 0x320   :  { %4176 = vperm.xlu1 %4521, %v4129_v16   ;;  %v6019_v6 = vsub.s32 %v2130_v39, %v4946_v50  ;;  %v2158_v36 = vadd.s32 4294967192, %v2069_v46  ;;  %v2087_v10 = vsel %vm2086_vm2, %v2085_v53, %v2080_v41  ;;  %v2113_v13 = vrot.slane %v5958_v5, %v6001_v54 }
 0x321   :  { %v5950_v7 = vpop.permute.xlu0 %2045  ;;  %v6025_v43 = vsub.s32 %v2137_v3, %v4946_v50  ;;  %v2165_v48 = vadd.s32 4294967184, %v2069_v46  ;;  %v2094_v56 = vsel %vm2093_vm3, %v2092_v18, %v2087_v10  ;;  %v6031_v59 = vsub.s32 %v2144_v27, %v4946_v50 }
 0x322   :  { %v2101_v22 = vsel %vm2100_vm4, %v2099_v63, %v2094_v56  ;;  %v2127_v30 = vrot.slane %v5950_v7, %v6012_v45  ;;  %v6037_v61 = vsub.s32 %v2151_v24, %v4946_v50  ;;  %v6043_v62 = vsub.s32 %v2158_v36, %v4946_v50 }
 0x323   :  { %v5962_v0 = vpop.permute.xlu1 %2042  ;;  %v2108_v31 = vsel %vm2107_vm5, %v2106_v42, %v2101_v22  ;;  %v2172_v5 = vadd.s32 4294967176, %v2069_v46  ;;  %v6049_v7 = vsub.s32 %v2165_v48, %v4946_v50 }
 0x324   :  { %v2120_v44 = vrot.slane %v5962_v0, %v6005_v29  ;;  %v2115_v0 = vsel %vm2114_vm6, %v2113_v13, %v2108_v31 }
 0x325   :  { %v2175_v58 = vsub.s32 %v2172_v5, %v4946_v50 }
 0x326   :  { %v2122_v19 = vsel %vm2121_vm7, %v2120_v44, %v2115_v0 }
 0x327   :  { %v5967_v11 = vpop.permute.xlu1 %2048  ;;  %v2129_v20 = vsel %vm2128_vm8, %v2127_v30, %v2122_v19 }
 0x328   :  { %v2134_v17 = vrot.slane %v5967_v11, %v6019_v6 }
 0x32a   :  { %v2136_v1 = vsel %vm2135_vm9, %v2134_v17, %v2129_v20 }
 0x32c   :  { %v5952_v25 = vpop.permute.xlu0 %2051 }
 0x32d   :  { %v2141_v47 = vrot.slane %v5952_v25, %v6025_v43 }
 0x32f   :  { %v2143_v52 = vsel %vm2142_vm10, %v2141_v47, %v2136_v1 }
 0x331   :  { %v5954_v60 = vpop.permute.xlu0 %2054 }
 0x332   :  { %v2148_v11 = vrot.slane %v5954_v60, %v6031_v59 }
 0x334   :  { %v2150_v55 = vsel %vm2149_vm11, %v2148_v11, %v2143_v52 }
 0x337   :  { %v5956_v38 = vpop.permute.xlu0 %2057 }
 0x338   :  { %v2155_v46 = vrot.slane %v5956_v38, %v6037_v61 }
 0x33a   :  { %v2157_v39 = vsel %vm2156_vm12, %v2155_v46, %v2150_v55 }
 0x33c   :  { %v5960_v8 = vpop.permute.xlu0 %2060 }
 0x33d   :  { %v2162_v25 = vrot.slane %v5960_v8, %v6043_v62 }
 0x33f   :  { %v2164_v53 = vsel %vm2163_vm13, %v2162_v25, %v2157_v39 }
 0x343   :  { %v5971_v4 = vpop.permute.xlu1 %4131 }
 0x344   :  { %v4181_v10 = vrot.slane %v5971_v4, %v5979_v26 }
 0x348   :  { %v5964_v32 = vpop.permute.xlu0 %4134 }
 0x349   :  { %v4185_v42 = vrot.slane %v5964_v32, %v5974_v14 }
 0x34b   :  { %v4186_v48 = vsel %vm2079_vm1, %v4185_v42, %v4181_v10 }
 0x34d   :  { %v5987_v33 = vpop.permute.xlu1 %4137 }
 0x34e   :  { %v4190_v36 = vrot.slane %v5987_v33, %v5982_v35 }
 0x350   :  { %v4191_v32 = vsel %vm2086_vm2, %v4190_v36, %v4186_v48 }
 0x353   :  { %v5969_v57 = vpop.permute.xlu0 %4140 }
 0x354   :  { %v4195_v49 = vrot.slane %v5969_v57, %v5985_v28 }
 0x356   :  { %v4196_v35 = vsel %vm2093_vm3, %v4195_v49, %v4191_v32 }
 0x358   :  { %v6007_v40 = vpop.permute.xlu1 %4143 }
 0x359   :  { %v4200_v13 = vrot.slane %v6007_v40, %v5991_v34 }
 0x35b   :  { %v4201_v57 = vsel %vm2100_vm4, %v4200_v13, %v4196_v35 }
 0x35e   :  { %v5976_v9 = vpop.permute.xlu0 %4146 }
 0x35f   :  { %v4205_v56 = vrot.slane %v5976_v9, %v5997_v23 }
 0x361   :  { %v4206_v28 = vsel %vm2107_vm5, %v4205_v56, %v4201_v57 }
 0x363   :  { %v4150_v16 = vpop.permute.xlu1 %4149 }
 0x364   :  { %v4210_v14 = vrot.slane %v4150_v16, %v6001_v54 }
 0x366   :  { %v4211_v9 = vsel %vm2114_vm6, %v4210_v14, %v4206_v28 }
 0x369   :  { %v5993_v21 = vpop.permute.xlu0 %4152 }
 0x36a   :  { %v4215_v4 = vrot.slane %v5993_v21, %v6005_v29 }
 0x36c   :  { %v4216_v54 = vsel %vm2121_vm7, %v4215_v4, %v4211_v9 }
 0x36e   :  { %v4156_v51 = vpop.permute.xlu1 %4155 }
 0x36f   :  { %v4220_v26 = vrot.slane %v4156_v51, %v6012_v45 }
 0x371   :  { %v4221_v21 = vsel %vm2128_vm8, %v4220_v26, %v4216_v54 }
 0x374   :  { %v6014_v37 = vpop.permute.xlu0 %4158 }
 0x375   :  { %v4225_v33 = vrot.slane %v6014_v37, %v6019_v6 }
 0x377   :  { %v4226_v45 = vsel %vm2135_vm9, %v4225_v33, %v4221_v21 }
 0x379   :  { %v2064_v12 = vpop.permute.xlu0 %2063 }
 0x37a   :  { %v2169_v60 = vrot.slane %v2064_v12, %v6049_v7 }
 0x37c   :  { %v2171_v8 = vsel %vm2170_vm14, %v2169_v60, %v2164_v53 }
 0x37f   :  { %v4162_v2 = vpop.permute.xlu1 %4161 }
 0x380   :  { %v4230_v34 = vrot.slane %v4162_v2, %v6025_v43 }
 0x382   :  { %v4231_v22 = vsel %vm2142_vm10, %v4230_v34, %v4226_v45 }
 0x384   :  { %v2067_v38 = vpop.permute.xlu0 %2066 }
 0x385   :  { %v2176_v3 = vrot.slane %v2067_v38, %v2175_v58 }
 0x387   :  { %v2178_v50 = vsel %vm2177_vm15, %v2176_v3, %v2171_v8 }
 0x388   :  { %v2185_v18 = vrot.slane %v2178_v50, %v5227_v15 }
 0x389   :  { %v4165_v27 = vpop.permute.xlu1 %4164 }
 0x38a   :  { %v2192_v63 = vrot.slane %v2185_v18, %v5227_v15  ;;  %v4235_v40 = vrot.slane %v4165_v27, %v6031_v59 }
 0x38c   :  { %2198 = vst.msk [vmem:[#allocation6] sm:$0x1] %vm6070_vm0, %v2192_v63  ;;  %v4236_v6 = vsel %vm2149_vm11, %v4235_v40, %v4231_v22 }
 0x38f   :  { %v4168_v24 = vpop.permute.xlu1 %4167 }
 0x390   :  { %v4240_v29 = vrot.slane %v4168_v24, %v6037_v61 }
 0x392   :  { %v4241_v43 = vsel %vm2156_vm12, %v4240_v29, %v4236_v6 }
 0x394   :  { %v4171_v44 = vpop.permute.xlu1 %4170 }
 0x395   :  { %v4245_v16 = vrot.slane %v4171_v44, %v6043_v62 }
 0x397   :  { %v4246_v31 = vsel %vm2163_vm13, %v4245_v16, %v4241_v43 }
 0x399   :  { %v4174_v23 = vpop.permute.xlu1 %4173 }
 0x39a   :  { %v4250_v37 = vrot.slane %v4174_v23, %v6049_v7 }
 0x39c   :  { %v4251_v17 = vsel %vm2170_vm14, %v4250_v37, %v4246_v31 }
 0x39f   :  { %v4177_v30 = vpop.permute.xlu1 %4176 }
 0x3a0   :  { %v4255_v59 = vrot.slane %v4177_v30, %v2175_v58 }
 0x3a2   :  { %v4256_v61 = vsel %vm2177_vm15, %v4255_v59, %v4251_v17 }
 0x3a3   :  { %v4263_v62 = vrot.slane %v4256_v61, %v5227_v15 }
 0x3a5   :  { %v4270_v5 = vrot.slane %v4263_v62, %v5227_v15 }
 0x3a7   :  { %4273 = vst.msk [vmem:[#allocation6 + $0x1] sm:$0x1] %vm6070_vm0, %v4270_v5 }
 0x3a8   :  { %4555 = shalt.err (!%p4552_p12)
}
 0x3a9   :  { %s4556_s24 = scalar_lea.hbm %s6138_s7, 32 }
 0x3aa   :  { %p4557_p13 = scmp.ne.s32.totalorder %s6138_s7, %s4556_s24  ;;  %p4560_p0 = scmp.lt.u32.totalorder %s4556_s24, %s6138_s7 }
 0x3ac   :  { %p4562_p1 = pnand %p4560_p0, %p4557_p13 }
 0x3ae   :  { %4565 = shalt.err (!%p4562_p1)
}
 0x3af   :  { %4283 = dma.vmem_to_hbm [thread:$0]  %s4281_s5, 32, %s6138_s7, [#allocation5]  }
 0x3b0   :  { %4568 = dma.done.wait [#allocation5], 32  }
 0x3b1   :  { %4569 = vsyncadd [#allocation5], 4294967264 }
 0x3b2   :  { %4287 = vsyncpa [#allocation4], 1 }
 0x3b3   :  { %4288 = vsyncpa [#allocation5], 1 }

</bundles_post_ra>
